<compile_context>
chip_gen: v5e
topology: v5e:2x2
jax: 0.10.0
libtpu: 0.0.40
codegen_flags: <defaults>
</compile_context>

<pallas_src>
import functools

import jax
import jax.numpy as jnp
from jax.experimental import pallas as pl
from jax.experimental.pallas import tpu as pltpu

EPS = 1e-5


# --------------------------------------------------------------------------- #
# Kernel body
# --------------------------------------------------------------------------- #
def _prenorm_linear_kernel(x_ref, g_ref, b_ref, w_ref, wb_ref, o_ref):
    """One (row-tile, column-tile) step: LayerNorm rows of x, then y @ w + wb."""
    x = x_ref[...].astype(jnp.float32)                         # (tm, D)
    mean = jnp.mean(x, axis=-1, keepdims=True)
    xc = x - mean
    var = jnp.mean(xc * xc, axis=-1, keepdims=True)            # biased, like nn.LayerNorm
    y = xc * jax.lax.rsqrt(var + EPS)
    y = y * g_ref[...].astype(jnp.float32) + b_ref[...].astype(jnp.float32)
    # MXU matmul in the weight's native dtype (bf16 fast path), f32 accumulation.
    y = y.astype(w_ref.dtype)
    out = jnp.dot(y, w_ref[...], preferred_element_type=jnp.float32)
    out = out + wb_ref[...].astype(jnp.float32)
    o_ref[...] = out.astype(o_ref.dtype)


# --------------------------------------------------------------------------- #
# One-time, cached capability probe for pipeline_mode=pl.Buffered(1)
# (replaces the previous broad try/except around the real pallas_call).
# --------------------------------------------------------------------------- #
@functools.lru_cache(maxsize=None)
def _buffered_one_supported() -> bool:
    if not hasattr(pl, "Buffered"):
        return False

    def _copy(x_ref, o_ref):
        o_ref[...] = x_ref[...]

    try:
        x = jnp.zeros((8, 128), jnp.float32)
        out = pl.pallas_call(
            _copy,
            out_shape=jax.ShapeDtypeStruct((16, 128), jnp.float32),
            grid=(2,),
            in_specs=[pl.BlockSpec((8, 128), lambda i: (0, 0),
                                   pipeline_mode=pl.Buffered(1))],
            out_specs=pl.BlockSpec((8, 128), lambda i: (i, 0)),
        )(x)
        jax.block_until_ready(out)
        return True
    except Exception:  # capability probe only; the real call is never retried
        return False


# --------------------------------------------------------------------------- #
# Generation-aware VMEM budget and tile selection
# --------------------------------------------------------------------------- #
def _vmem_limit_bytes() -> int:
    """~100 MiB on 128 MiB parts (v5e/v6e), ~40 MiB on v7x (64 MiB)."""
    try:
        cap = int(pltpu.get_tpu_info().vmem_capacity_bytes)
    except Exception:  # query only; fall back to the smallest (v7x) VMEM
        cap = 64 * 2**20
    return int(max(32 * 2**20, min(cap - 24 * 2**20, 100 * 2**20)))


def _vmem_estimate(tm, tn, D, in_b, w_b, out_b, single_buffer_weight):
    """Conservative VMEM footprint for one pipeline configuration (bytes)."""
    est = 2 * tm * D * in_b                                    # x row tile (double-buffered)
    est += 2 * tm * tn * out_b                                 # output tile (double-buffered)
    est += (1 if single_buffer_weight else 2) * D * tn * w_b   # weight tile
    est += 2 * (2 * D * in_b + 2 * tn * w_b)                   # gamma/beta + fn bias (tiny)
    est += 5 * tm * D * 4                                      # live f32 LN temporaries
    est += tm * tn * 4                                         # f32 matmul acc before cast
    return est


_ROW_CANDS = (1024, 512, 256, 128, 64, 32, 16, 8)   # multiples of 256 preferred for the MXU


def _choose_tiles(N, D, DO, in_b, w_b, out_b, budget, single_buf_weight, row_mult):
    row_cands = [t for t in _ROW_CANDS if t % row_mult == 0]

    def snap_rows(t):
        t = min(t, N)
        if t < N:
            t = max(row_mult, (t // row_mult) * row_mult)
        return t

    # Phase 1 (preferred): full-DO weight tile -> weight fetched from HBM once,
    # LayerNorm runs exactly once per row tile.
    for t in row_cands:
        tm = snap_rows(t)
        if _vmem_estimate(tm, DO, D, in_b, w_b, out_b, single_buf_weight) <= budget:
            return tm, DO
    # Phase 2: weight-stationary column tiling (column axis OUTER, rows INNER).
    tn_cands = [t for t in (4096, 2048, 1024, 512, 256, 128) if t < DO]
    for tn in tn_cands:
        for t in row_cands:
            tm = snap_rows(t)
            if _vmem_estimate(tm, tn, D, in_b, w_b, out_b, False) <= budget:
                return tm, tn
    # Last resort: smallest legal tiles.
    return snap_rows(row_mult), min(DO, 128)


# --------------------------------------------------------------------------- #
# Public wrapper
# --------------------------------------------------------------------------- #
def prenorm_linear(x, gamma, beta, w, wb, *, tm=None, tn=None):
    """PreNorm with fn = Linear: returns LayerNorm(x) @ w + wb.

    x: [..., D]; gamma/beta: [D]; w: [D, DO]; wb: [DO].
    """
    *lead, D = x.shape
    DO = w.shape[1]
    N = 1
    for s in lead:
        N *= s

    x2 = x.reshape(N, D)
    g2 = gamma.reshape(1, D)
    b2 = beta.reshape(1, D)
    wb2 = wb.reshape(1, DO)

    in_b = x.dtype.itemsize
    w_b = w.dtype.itemsize
    out_b = in_b
    row_mult = 16 if in_b < 4 else 8               # bf16 packs 16 rows / vreg

    vmem_limit = _vmem_limit_bytes()
    budget = int(vmem_limit * 0.85)
    use_buffered = _buffered_one_supported()

    if tm is None or tn is None:
        auto_tm, auto_tn = _choose_tiles(N, D, DO, in_b, w_b, out_b, budget,
                                         use_buffered, row_mult)
        tm = auto_tm if tm is None else tm
        tn = auto_tn if tn is None else tn

    # Snap caller-provided tiles to legal (8/16, 128) values.
    tm = int(min(tm, N))
    if tm < N and tm % row_mult != 0:
        tm = max(row_mult, (tm // row_mult) * row_mult)
    tn = int(min(tn, DO))
    if tn < DO and tn % 128 != 0:
        tn = max(128, (tn // 128) * 128)
    if DO < 128:
        tn = DO

    grid_m = pl.cdiv(N, tm)
    grid_n = pl.cdiv(DO, tn)
    weight_resident = (grid_n == 1)

    # Blocks whose index is constant over the whole grid can be single-buffered.
    const_mode = pl.Buffered(1) if (use_buffered and weight_resident) else None

    def _spec(shape, index_map, mode=None):
        if mode is None:
            return pl.BlockSpec(shape, index_map)
        return pl.BlockSpec(shape, index_map, pipeline_mode=mode)

    # Weight-stationary grid: column tiles OUTER (j), row tiles INNER (i).  The
    # (D, tn) weight block index is constant across the inner sweep, so its DMA
    # is issued once per column tile (exactly once total when grid_n == 1).
    in_specs = [
        _spec((tm, D), lambda j, i: (i, 0)),                   # x row tile (streamed)
        _spec((1, D), lambda j, i: (0, 0), const_mode),        # gamma (resident)
        _spec((1, D), lambda j, i: (0, 0), const_mode),        # beta  (resident)
        _spec((D, tn), lambda j, i: (0, j), const_mode),       # fn weight (resident per j)
        _spec((1, tn), lambda j, i: (0, j), const_mode),       # fn bias
    ]
    out_specs = pl.BlockSpec((tm, tn), lambda j, i: (i, j))

    # Never shard the weight-reuse (inner, row) axis across TensorCores when the
    # weight is revisited across it; the independent column axis stays parallel.
    if weight_resident:
        dim_sem = ("parallel", "parallel")
    else:
        dim_sem = ("parallel", "arbitrary")

    cost = pl.CostEstimate(
        flops=2 * N * D * DO + 8 * N * D,
        transcendentals=N,                                     # one rsqrt per row
        bytes_accessed=(N * D * in_b + D * DO * w_b + N * DO * out_b
                        + 2 * D * in_b + DO * w_b),
    )

    out2 = pl.pallas_call(
        _prenorm_linear_kernel,
        out_shape=jax.ShapeDtypeStruct((N, DO), x.dtype),
        grid_spec=pltpu.PrefetchScalarGridSpec(
            num_scalar_prefetch=0,
            grid=(grid_n, grid_m),
            in_specs=in_specs,
            out_specs=out_specs,
        ),
        compiler_params=pltpu.CompilerParams(
            dimension_semantics=dim_sem,
            vmem_limit_bytes=vmem_limit,
        ),
        cost_estimate=cost,
    )(x2, g2, b2, w, wb2)

    return out2.reshape(*lead, DO)


# --------------------------------------------------------------------------- #
# Pure-JAX reference
# --------------------------------------------------------------------------- #
def prenorm_linear_ref(x, gamma, beta, w, wb):
    xf = x.astype(jnp.float32)
    mean = jnp.mean(xf, axis=-1, keepdims=True)
    var = jnp.mean((xf - mean) ** 2, axis=-1, keepdims=True)
    xn = (xf - mean) / jnp.sqrt(var + EPS)
    y = xn * gamma.astype(jnp.float32) + beta.astype(jnp.float32)
    return y @ w.astype(jnp.float32) + wb.astype(jnp.float32)


if __name__ == "__main__":
    key = jax.random.PRNGKey(0)
    # Small but representative: N = B*S = 512 rows (fills the MXU properly),
    # feature dims multiples of 128 for lane-dense stores.
    B, S, D, DO = 2, 256, 256, 256
    k1, k2, k3, k4, k5 = jax.random.split(key, 5)

    x = jax.random.normal(k1, (B, S, D), dtype=jnp.float32)
    gamma = 1.0 + 0.1 * jax.random.normal(k2, (D,), jnp.float32)
    beta = 0.1 * jax.random.normal(k3, (D,), jnp.float32)
    w = jax.random.normal(k4, (D, DO), dtype=jnp.float32) * 0.05
    wb = 0.1 * jax.random.normal(k5, (DO,), jnp.float32)

    ref = prenorm_linear_ref(x, gamma, beta, w, wb)

    # 1) f32, resident-weight path (grid_n == 1), two row tiles.
    out = jax.block_until_ready(prenorm_linear(x, gamma, beta, w, wb, tm=256))
    assert out.shape == (B, S, DO)
    err = float(jnp.max(jnp.abs(out - ref)))
    assert err < 5e-3, f"f32 max err {err}"

    # 2) Weight-stationary tiled path (grid_n == 2, column-outer / row-inner).
    out_t = jax.block_until_ready(prenorm_linear(x, gamma, beta, w, wb, tm=256, tn=128))
    err_t = float(jnp.max(jnp.abs(out_t - ref)))
    assert err_t < 5e-3, f"tiled max err {err_t}"

    # 3) bf16 fast path: native-bf16 MXU matmul with f32 stats/accumulation.
    out_bf = jax.block_until_ready(
        prenorm_linear(x.astype(jnp.bfloat16),
                       gamma.astype(jnp.bfloat16),
                       beta.astype(jnp.bfloat16),
                       w.astype(jnp.bfloat16),
                       wb.astype(jnp.bfloat16)))
    assert out_bf.shape == (B, S, DO)
    err_bf = float(jnp.max(jnp.abs(out_bf.astype(jnp.float32) - ref)))
    assert err_bf < 0.2, f"bf16 max err {err_bf}"

    print("KERNEL_OK")
</pallas_src>

<mosaic_0001>
module attributes {stable_mosaic.version = 11 : i64} {
  func.func @_copy(%arg0: i32, %arg1: memref<8x128xf32, #tpu.memory_space<vmem>>, %arg2: memref<8x128xf32, #tpu.memory_space<vmem>>) attributes {dimension_semantics = [#tpu.dimension_semantics<arbitrary>], iteration_bounds = array<i64: 2>, scalar_prefetch = 0 : i64, scratch_operands = 0 : i64, tpu.core_type = #tpu.core_type<tc>, window_params = [{pipeline_mode = #tpu.pipeline_mode<synchronous>, transform_indices = @transform_0, window_bounds = array<i64: 8, 128>}, {transform_indices = @transform_1, window_bounds = array<i64: 8, 128>}]} {
    %c0 = arith.constant 0 : index
    %c0_0 = arith.constant 0 : index
    %0 = vector.load %arg1[%c0, %c0_0] : memref<8x128xf32, #tpu.memory_space<vmem>>, vector<8x128xf32>
    %c0_1 = arith.constant 0 : index
    %c0_2 = arith.constant 0 : index
    %1 = vector.load %arg2[%c0_1, %c0_2] : memref<8x128xf32, #tpu.memory_space<vmem>>, vector<8x128xf32>
    tpu.vector_store %arg2[%c0_1, %c0_2], %0 {strides = array<i32>} : memref<8x128xf32, #tpu.memory_space<vmem>>, vector<8x128xf32>,
    return
  }
  func.func @transform_0(%arg0: i32) -> (i32, i32) {
    %c0_i32 = arith.constant 0 : i32
    %c0_i32_0 = arith.constant 0 : i32
    %c0_i32_1 = arith.constant 0 : i32
    return %c0_i32, %c0_i32_0 : i32, i32
  }
  func.func @transform_1(%arg0: i32) -> (i32, i32) {
    %c0_i32 = arith.constant 0 : i32
    %c0_i32_0 = arith.constant 0 : i32
    return %arg0, %c0_i32 : i32, i32
  }
}

module attributes {stable_mosaic.version = 11 : i64} {
  func.func @_prenorm_linear_kernel(%arg0: i32, %arg1: i32, %arg2: memref<256x256xf32, #tpu.memory_space<vmem>>, %arg3: memref<1x256xf32, #tpu.memory_space<vmem>>, %arg4: memref<1x256xf32, #tpu.memory_space<vmem>>, %arg5: memref<256x256xf32, #tpu.memory_space<vmem>>, %arg6: memref<1x256xf32, #tpu.memory_space<vmem>>, %arg7: memref<256x256xf32, #tpu.memory_space<vmem>>) attributes {dimension_semantics = [#tpu.dimension_semantics<parallel>, #tpu.dimension_semantics<parallel>], iteration_bounds = array<i64: 1, 2>, scalar_prefetch = 0 : i64, scratch_operands = 0 : i64, tpu.core_type = #tpu.core_type<tc>, window_params = [{transform_indices = @transform_0, window_bounds = array<i64: 256, 256>}, {pipeline_mode = #tpu.pipeline_mode<synchronous>, transform_indices = @transform_1, window_bounds = array<i64: 1, 256>}, {pipeline_mode = #tpu.pipeline_mode<synchronous>, transform_indices = @transform_2, window_bounds = array<i64: 1, 256>}, {transform_indices = @transform_3, window_bounds = array<i64: 256, 256>}, {transform_indices = @transform_4, window_bounds = array<i64: 1, 256>}, {transform_indices = @transform_5, window_bounds = array<i64: 256, 256>}]} {
    %c0 = arith.constant 0 : index
    %c0_0 = arith.constant 0 : index
    %0 = vector.load %arg2[%c0, %c0_0] : memref<256x256xf32, #tpu.memory_space<vmem>>, vector<256x256xf32>
    %cst = arith.constant dense<0.000000e+00> : vector<256xf32>
    %1 = vector.multi_reduction <add>, %0, %cst [1] : vector<256x256xf32> to vector<256xf32>
    %2 = vector.shape_cast %1 : vector<256xf32> to vector<256x1xf32>
    %cst_1 = arith.constant 2.560000e+02 : f32
    %3 = vector.broadcast %cst_1 : f32 to vector<256x1xf32>
    %4 = arith.divf %2, %3 : vector<256x1xf32>
    %5 = vector.broadcast %4 : vector<256x1xf32> to vector<256x256xf32>
    %6 = arith.subf %0, %5 : vector<256x256xf32>
    %7 = arith.mulf %6, %6 : vector<256x256xf32>
    %cst_2 = arith.constant dense<0.000000e+00> : vector<256xf32>
    %8 = vector.multi_reduction <add>, %7, %cst_2 [1] : vector<256x256xf32> to vector<256xf32>
    %9 = vector.shape_cast %8 : vector<256xf32> to vector<256x1xf32>
    %cst_3 = arith.constant 2.560000e+02 : f32
    %10 = vector.broadcast %cst_3 : f32 to vector<256x1xf32>
    %11 = arith.divf %9, %10 : vector<256x1xf32>
    %cst_4 = arith.constant 9.99999974E-6 : f32
    %12 = vector.broadcast %cst_4 : f32 to vector<256x1xf32>
    %13 = arith.addf %11, %12 : vector<256x1xf32>
    %14 = math.rsqrt %13 : vector<256x1xf32>
    %15 = vector.broadcast %14 : vector<256x1xf32> to vector<256x256xf32>
    %16 = arith.mulf %6, %15 : vector<256x256xf32>
    %c0_5 = arith.constant 0 : index
    %c0_6 = arith.constant 0 : index
    %17 = vector.load %arg3[%c0_5, %c0_6] : memref<1x256xf32, #tpu.memory_space<vmem>>, vector<1x256xf32>
    %18 = vector.broadcast %17 : vector<1x256xf32> to vector<256x256xf32>
    %19 = arith.mulf %16, %18 : vector<256x256xf32>
    %c0_7 = arith.constant 0 : index
    %c0_8 = arith.constant 0 : index
    %20 = vector.load %arg4[%c0_7, %c0_8] : memref<1x256xf32, #tpu.memory_space<vmem>>, vector<1x256xf32>
    %21 = vector.broadcast %20 : vector<1x256xf32> to vector<256x256xf32>
    %22 = arith.addf %19, %21 : vector<256x256xf32>
    %c0_9 = arith.constant 0 : index
    %c0_10 = arith.constant 0 : index
    %23 = vector.load %arg5[%c0_9, %c0_10] : memref<256x256xf32, #tpu.memory_space<vmem>>, vector<256x256xf32>
    %cst_11 = arith.constant dense<0.000000e+00> : vector<256x256xf32>
    %24 = tpu.matmul %22, %23, %cst_11 {dimension_numbers = #tpu.dot_dimension_numbers<[1], [0], [0], [1], [0, 0, 1, 1], [], []>} : vector<256x256xf32>, vector<256x256xf32>, vector<256x256xf32> -> vector<256x256xf32>
    %c0_12 = arith.constant 0 : index
    %c0_13 = arith.constant 0 : index
    %25 = vector.load %arg6[%c0_12, %c0_13] : memref<1x256xf32, #tpu.memory_space<vmem>>, vector<1x256xf32>
    %26 = vector.broadcast %25 : vector<1x256xf32> to vector<256x256xf32>
    %27 = arith.addf %24, %26 : vector<256x256xf32>
    %c0_14 = arith.constant 0 : index
    %c0_15 = arith.constant 0 : index
    %28 = vector.load %arg7[%c0_14, %c0_15] : memref<256x256xf32, #tpu.memory_space<vmem>>, vector<256x256xf32>
    tpu.vector_store %arg7[%c0_14, %c0_15], %27 {strides = array<i32>} : memref<256x256xf32, #tpu.memory_space<vmem>>, vector<256x256xf32>,
    return
  }
  func.func @transform_0(%arg0: i32, %arg1: i32) -> (i32, i32) {
    %c0_i32 = arith.constant 0 : i32
    %c0_i32_0 = arith.constant 0 : i32
    return %arg1, %c0_i32 : i32, i32
  }
  func.func @transform_1(%arg0: i32, %arg1: i32) -> (i32, i32) {
    %c0_i32 = arith.constant 0 : i32
    %c0_i32_0 = arith.constant 0 : i32
    %c0_i32_1 = arith.constant 0 : i32
    return %c0_i32, %c0_i32_0 : i32, i32
  }
  func.func @transform_2(%arg0: i32, %arg1: i32) -> (i32, i32) {
    %c0_i32 = arith.constant 0 : i32
    %c0_i32_0 = arith.constant 0 : i32
    %c0_i32_1 = arith.constant 0 : i32
    return %c0_i32, %c0_i32_0 : i32, i32
  }
  func.func @transform_3(%arg0: i32, %arg1: i32) -> (i32, i32) {
    %c0_i32 = arith.constant 0 : i32
    %c0_i32_0 = arith.constant 0 : i32
    return %c0_i32, %arg0 : i32, i32
  }
  func.func @transform_4(%arg0: i32, %arg1: i32) -> (i32, i32) {
    %c0_i32 = arith.constant 0 : i32
    %c0_i32_0 = arith.constant 0 : i32
    return %c0_i32, %arg0 : i32, i32
  }
  func.func @transform_5(%arg0: i32, %arg1: i32) -> (i32, i32) {
    %c0_i32 = arith.constant 0 : i32
    return %arg1, %arg0 : i32, i32
  }
}

</mosaic_0001>

<bundles_post_ra>
// kernel: tpu_custom_call.1
= control target key start
LH: loop header
LB: loop body
LE: loop exit
PB: predicated region body
PF: predicated region fallthrough
CT: control target
= control target key end

     0   :  { %6 = vsyncpa [#allocation3], 0  ;;  %s440_s0 = inlined_call_operand.hbm [shape: f32[8,128], index: 0, kind: input, shape index: {}]   ;;  %s441_s1 = inlined_call_operand.hbm [shape: f32[16,128], index: 1, kind: output, shape index: {}]  }
   0x1   :  { %7 = vsyncpa [#allocation4], 0 }
   0x2   :  { %9 = vsyncpa [#allocation4 + $0x1], 0  ;;  %s356_s6 = smov 0   ;;  %s358_s7 = smov 0  }
   0x3   :  { %s360_s8 = smov 0   ;;  %s362_s9 = smov 0  }
   0x4 LB: > { %s377_s10 = sadd.s32 4294967295, %s343_s9   ;;  %s187_s11 = sadd.s32 4294967294, %s343_s9   ;;  %s343_s9 = sphi %s362_s9, %s447_s9   ;;  %s339_s8 = sphi %s360_s8, %s446_s8   ;;  %s335_s7 = sphi %s358_s7, %s445_s7   ;;  %s331_s6 = sphi %s356_s6, %s444_s6  }
   0x5   : > { %s381_s12 = sadd.s32 1, %s343_s9   ;;  %s43_s13 = sadd.s32 1, %s339_s8 }
   0x6   : > { %s40_s14 = ssub.s32 %s343_s9, %s381_s12  ;;  %p53_p0 = scmp.ne.s32.totalorder %s339_s8, %s335_s7 }
   0x7   : > { %p41_p1 = scmp.eq.s32.totalorder %s40_s14, 0  ;;  %p54_p2 = scmp.eq.s32.totalorder %s377_s10, 1 }
   0x8   : > { %p59_p3 = scmp.ne.s32.totalorder %s335_s7, %s331_s6  ;;  %p60_p4 = scmp.eq.s32.totalorder %s187_s11, 1 }
   0x9   : > { %s392_s15 = scalar_select %p41_p1, %s339_s8, %s43_s13  }
   0xa   : > { %p394_p5 = por %p54_p2, %p53_p0  ;;  %p398_p6 = por %p60_p4, %p59_p3 }
   0xb   : > { %p188_p7 = scmp.ge.s32.totalorder %s343_s9, 1  ;;  %p67_p8 = scmp.lt.s32.totalorder %s343_s9, 3 }
   0xc   : > { %p211_p9 = scmp.eq.s32.totalorder %s377_s10, 0  ;;  %s79_s20 = sshll.u32 %s440_s0, 4  ;;  %s80_s20 = int_to_ptr.hbm [resolvable:$true] %s79_s20 }
   0xd   : > { %p68_p10 = pnand %p188_p7, %p67_p8  ;;  %s345_s21 = smov [#allocation2]  }
   0xe   : > { %s81_s22 = sshll.u32 %s345_s21, 4  ;;  %s82_s22 = int_to_ptr.vmem [resolvable:$true] %s81_s22 }
   0xf   : > { %p203_p11 = pneg %p68_p10  ;;  %94 = sbr.rel (%p68_p10) target bundleno = 37 (0x25), region = 24 }
  0x11   : > { %p204_p12 = pnand %p211_p9, %p203_p11 }
  0x13   : > { %206 = dma.hbm_to_vmem [thread:$0]  (!%p204_p12), %s80_s20, 128, %s82_s22, [#allocation3]  }
  0x14   : > { %322 = dma.done.wait (%p211_p9), [#allocation3], 128  }
  0x15   : > { %324 = vsyncadd (%p211_p9), [#allocation3], 4294967168  ;;  %s107_s23 = sand.u32 1, %s335_s7   ;;  %s194_s24 = sshll.u32 %s377_s10, 3  ;;  %v110_v0 = vld [vmem:[#allocation2] sm:$0xff] }
  0x16   : > { %s192_s25 = sshll.u32 %s107_s23, 3  ;;  %s123_s28 = scalar_lea.hbm %s441_s1, %s194_s24 }
  0x17   : > { %s109_s29 = scalar_lea.vmem [#allocation5], %s192_s25  ;;  %s127_s2 = sshll.u32 %s123_s28, 4  ;;  %s128_s2 = int_to_ptr.hbm [resolvable:$true] %s127_s2 }
  0x18   : > { %s125_s30 = sshll.u32 %s109_s29, 4  ;;  %111 = vst [vmem:[%s109_s29] sm:$0xff] %v110_v0  ;;  %s113_s3 = scalar_lea.sflag [#allocation4], %s107_s23  ;;  %s126_s30 = int_to_ptr.vmem [resolvable:$true] %s125_s30 }
  0x19   : > { %s291_s4 = sshra.s32 %s128_s2, 4  ;;  %s297_s13 = scalar_lea.hbm %s441_s1, 16  ;;  %s292_s4 = int_to_ptr.hbm [resolvable:$true] %s291_s4 }
  0x1a   : > { %s293_s5 = scalar_lea.hbm %s292_s4, 8  ;;  %p298_p2 = scmp.lt.s32.totalorder %s292_s4, %s441_s1 }
  0x1b   : > { %p294_p13 = scmp.ne.s32.totalorder %s292_s4, %s293_s5  ;;  %p299_p3 = scmp.lt.s32.totalorder %s297_s13, %s293_s5 }
  0x1d   : > { %p295_p0 = pnand %p294_p13, %p394_p5  ;;  %p300_p4 = por %p299_p3, %p298_p2 }
  0x1f   : > { %p296_p1 = pneg %p295_p0 }
  0x21   : > { %p301_p7 = pnand %p300_p4, %p296_p1 }
  0x23   : > { %304 = shalt.err (!%p301_p7)
}
  0x24   : > { %201 = dma.vmem_to_hbm [thread:$0]  (%p394_p5), %s126_s30, 128, %s128_s2, %s113_s3  }
  0x25 PF: > { %p213_p8 = scmp.ge.s32.totalorder %s343_s9, 2  ;;  %s139_s19 = sand.u32 1, %s331_s6  }
  0x26   : > { %s140_s20 = scalar_lea.sflag [#allocation4], %s139_s19 }
  0x27   : > { %p208_p9 = pnand %p213_p8, %p398_p6 }
  0x29   : > { %p209_p10 = pneg %p208_p9 }
  0x2b   : > { %326 = dma.done.wait (%p209_p10), %s140_s20, 128  }
  0x2c   : > { %328 = vsyncadd (%p209_p10), %s140_s20, 4294967168  ;;  %p12_p11 = scmp.ge.s32.totalorder %s381_s12, 4   ;;  %s444_s6 = smov %s335_s7 }
  0x2d   : > { %s445_s7 = smov %s339_s8  ;;  %s446_s8 = smov %s392_s15 }
  0x2e   : > { %s447_s9 = smov %s381_s12  ;;  %14 = sbr.rel (!%p12_p11) target bundleno = 4 (0x4), region = 61 }
  0x33   :  { %146 = vsyncpa [#allocation3], 1 }
  0x34   :  { %148 = vsyncpa [#allocation3 + $0x1], 1 }
  0x35   :  { %149 = vsyncpa [#allocation4], 1 }
  0x36   :  { %151 = vsyncpa [#allocation4 + $0x1], 1 }

// kernel: tpu_custom_call.1
= control target key start
LH: loop header
LB: loop body
LE: loop exit
PB: predicated region body
PF: predicated region fallthrough
CT: control target
= control target key end

     0   :  { %s4012_s0 = inlined_call_operand.hbm [shape: f32[512,256], index: 0, kind: input, shape index: {}]   ;;  %s4013_s1 = inlined_call_operand.hbm [shape: f32[1,256], index: 1, kind: input, shape index: {}]   ;;  %s4014_s2 = inlined_call_operand.hbm [shape: f32[1,256], index: 2, kind: input, shape index: {}]   ;;  %s4015_s3 = inlined_call_operand.hbm [shape: f32[256,256], index: 3, kind: input, shape index: {}]   ;;  %s4016_s4 = inlined_call_operand.vmem [shape: f32[1,256], index: 4, kind: input, shape index: {}]   ;;  %s4017_s5 = inlined_call_operand.hbm [shape: f32[512,256], index: 5, kind: output, shape index: {}]  }
   0x1   :  { %4032 = sst [smem:[#allocation27_spill]] %s4013_s1 }
   0x2   :  { %4033 = sst [smem:[#allocation28_spill]] %s4014_s2 }
   0x3   :  { %4034 = sst [smem:[#allocation29_spill]] %s4015_s3 }
   0x4   :  { %10 = vsyncpa [#allocation3], 0 }
   0x5   :  { %12 = vsyncpa [#allocation3 + $0x1], 0 }
   0x6   :  { %13 = vsyncpa [#allocation6], 0 }
   0x7   :  { %14 = vsyncpa [#allocation9], 0 }
   0x8   :  { %15 = vsyncpa [#allocation4], 0 }
   0x9   :  { %17 = vsyncpa [#allocation4 + $0x1], 0  ;;  %s2522_s18 = smov 0   ;;  %s2524_s19 = smov 0  }
   0xa   :  { %s2526_s20 = smov 0   ;;  %s2528_s21 = smov 0  }
   0xb   :  { %s2530_s22 = smov 0   ;;  %s2532_s23 = smov 0  }
   0xc LB: > { %s2080_s24 = sadd.s32 4294967295, %s2482_s23   ;;  %s2081_s25 = sadd.s32 4294967294, %s2482_s23   ;;  %s2482_s23 = sphi %s2532_s23, %s23_s23   ;;  %s2478_s22 = sphi %s2530_s22, %s4084_s22   ;;  %s2474_s21 = sphi %s2528_s21, %s4083_s21   ;;  %s2470_s20 = sphi %s2526_s20, %s4082_s20   ;;  %s2466_s19 = sphi %s2524_s19, %s4081_s19   ;;  %s2462_s18 = sphi %s2522_s18, %s4080_s18  }
   0xd   : > { %p55_p0 = scmp.ne.s32.totalorder %s2466_s19, %s2462_s18  ;;  %p2556_p1 = scmp.eq.s32.totalorder %s2080_s24, 0 }
   0xe   : > { %p2560_p2 = scmp.eq.s32.totalorder %s2080_s24, 1  ;;  %p181_p3 = scmp.eq.s32.totalorder %s2081_s25, 1 }
   0xf   : > { %p2566_p4 = por %p2556_p1, %p55_p0  ;;  %p2082_p5 = scmp.ge.s32.totalorder %s2482_s23, 1 }
  0x10   : > { %p2571_p6 = por %p181_p3, %p55_p0  ;;  %p188_p7 = scmp.lt.s32.totalorder %s2482_s23, 3 }
  0x11   : > { %s4039_s1 = sld [smem:[#allocation27_spill]]  ;;  %p2087_p9 = scmp.ge.s32.totalorder %s2482_s23, 2 }
  0x12   : > { %p2579_p8 = pnand %p2082_p5, %p188_p7  ;;  %s2484_s9 = smov [#allocation5]  }
  0x13   : > { %s202_s10 = sshll.u32 %s2484_s9, 4  ;;  %s4041_s2 = sld [smem:[#allocation28_spill]]  ;;  %s203_s10 = int_to_ptr.vmem [resolvable:$true] %s202_s10 }
  0x14   : > { %p2124_p10 = pneg %p2579_p8  ;;  %s4043_s3 = sld [smem:[#allocation29_spill]] }
  0x15   : > { %s2485_s24 = smov [#allocation7]   ;;  %s2486_s30 = smov [#allocation8]  }
  0x16   : > { %p2591_p11 = pnand %p2124_p10, %p2556_p1  ;;  %s214_s25 = sshll.u32 %s2485_s24, 4  ;;  %s215_s25 = int_to_ptr.vmem [resolvable:$true] %s214_s25 }
  0x17   : > { %s200_s7 = sshll.u32 %s4039_s1, 4  ;;  %s228_s6 = sshll.u32 %s2486_s30, 4  ;;  %s201_s7 = int_to_ptr.hbm [resolvable:$true] %s200_s7  ;;  %s229_s6 = int_to_ptr.vmem [resolvable:$true] %s228_s6 }
  0x18   : > { %2127 = dma.hbm_to_vmem [thread:$0]  (!%p2591_p11), %s201_s7, 32, %s203_s10, [#allocation6]  }
  0x19   : > { %s212_s13 = sshll.u32 %s4041_s2, 4  ;;  %s4018_s9 = smov 256   ;;  %s213_s13 = int_to_ptr.hbm [resolvable:$true] %s212_s13 }
  0x1a   : > { %s226_s17 = sshll.u32 %s4043_s3, 4  ;;  %s4019_s11 = smov 16   ;;  %s227_s17 = int_to_ptr.hbm [resolvable:$true] %s226_s17 }
  0x1b   : > { %2130 = dma.hbm_to_vmem [thread:$0]  (!%p2591_p11), %s213_s13, 32, %s215_s25, [#allocation6]  }
  0x1c   : > { %2133 = dma.hbm_to_vmem [thread:$0]  (!%p2591_p11), %s227_s17, 8192, %s229_s6, [#allocation9], %s4018_s9, %s4018_s9, %s4019_s11  }
  0x1d   : > { %s42_s7 = sadd.s32 1, %s2470_s20  ;;  %s32_s10 = sadd.s32 1, %s2478_s22 }
  0x1e   : > { %p49_p12 = scmp.ne.s32.totalorder %s2470_s20, %s2466_s19  ;;  %p33_p13 = scmp.ge.s32.totalorder %s32_s10, 2 }
  0x1f   : > { %p50_p0 = scmp.eq.s32.totalorder %s2482_s23, 0  ;;  %p2145_p5 = scmp.lt.s32.totalorder %s2482_s23, 2 }
  0x20   : > { %p2614_p3 = por %p2560_p2, %p49_p12  ;;  %s4086_s10 = smov (%p33_p13, %s32_s10), 0 }
  0x21   : > { %p2621_p7 = por %p50_p0, %p49_p12  ;;  %s250_s14 = sand.u32 1, %s2470_s20  }
  0x22   : > { %s39_s15 = ssub.s32 %s2478_s22, %s4086_s10  ;;  %s2088_s16 = sshll.u32 %s250_s14, 9 }
  0x23   : > { %p40_p10 = scmp.eq.s32.totalorder %s39_s15, 0  ;;  %s2105_s17 = sshll.u32 %s2478_s22, 9 }
  0x24   : > { %s260_s30 = scalar_lea.hbm %s4012_s0, %s2105_s17  ;;  %s254_s6 = scalar_lea.vmem [#allocation2], %s2088_s16 }
  0x25   : > { %s2630_s27 = scalar_select %p40_p10, %s2470_s20, %s42_s7  }
  0x26   : > { %s263_s9 = sshll.u32 %s254_s6, 4  ;;  %s261_s11 = sshll.u32 %s260_s30, 4  ;;  %s264_s9 = int_to_ptr.vmem [resolvable:$true] %s263_s9  ;;  %s262_s11 = int_to_ptr.hbm [resolvable:$true] %s261_s11 }
  0x27   : > { %p2135_p2 = pnand %p2145_p5, %p2621_p7  ;;  %s251_s1 = scalar_lea.sflag [#allocation3], %s250_s14 }
  0x28   : > { %s4046_s2 = smov 16   ;;  %s4047_s3 = smov 256  }
  0x29   : > { %2137 = dma.hbm_to_vmem [thread:$0]  (!%p2135_p2), %s262_s11, 8192, %s264_s9, %s251_s1, %s4047_s3, %s4047_s3, %s4046_s2  }
  0x2a   : > { %275 = sbr.rel (%p2579_p8) target bundleno = 921 (0x399), region = 40 }
  0x2f   : > { %s2645_s7 = sand.u32 1, %s2466_s19  }
  0x30   : > { %s2093_s15 = sshll.u32 %s2645_s7, 9  ;;  %s278_s16 = scalar_lea.sflag [#allocation3], %s2645_s7 }
  0x31   : > { %s2651_s13 = scalar_lea.vmem [#allocation2], %s2093_s15 }
  0x32   : > { %2445 = dma.done.wait (%p2566_p4), %s278_s16, 8192  }
  0x33   : > { %2447 = vsyncadd (%p2566_p4), %s278_s16, 4294959104 }
  0x34   : > { %2449 = dma.done.wait (%p2556_p1), [#allocation6], 64  }
  0x35   : > { %2451 = vsyncadd (%p2556_p1), [#allocation6], 4294967232 }
  0x36   : > { %2453 = dma.done.wait (%p2556_p1), [#allocation9], 8192  }
  0x37   : > { %2455 = vsyncadd (%p2556_p1), [#allocation9], 4294959104  ;;  %v341_v0 = vld [vmem:[%s2651_s13 + $0x20] sm:$0xff]  ;;  %v342_v1 = vld [vmem:[%s2651_s13 + $0x28] sm:$0xff]  ;;  %v2489_v24 = vmov 256.0   ;;  %s3269_s3 = scalar_lea.vmem [#allocation10], %s2093_s15 }
  0x38   : > { %v337_v2 = vld [vmem:[%s2651_s13] sm:$0xff]  ;;  %v407_v3 = vadd.f32 %v342_v1, %v341_v0  ;;  %v338_v4 = vld [vmem:[%s2651_s13 + $0x8] sm:$0xff]  ;;  %v339_v9 = vld [vmem:[%s2651_s13 + $0x10] sm:$0xff]  ;;  %2206 = vrcp.f32 %v2489_v24  ;;  %s2107_s26 = sshll.u32 %s2474_s21, 9  ;;  %s1950_s11 = sshll.u32 %s3269_s3, 4  ;;  %s1951_s11 = int_to_ptr.vmem [resolvable:$true] %s1950_s11 }
  0x39   : > { %v2670_v5 = vld [vmem:[%s2651_s13 + $0x40] sm:$0xff]  ;;  %v2673_v6 = vld [vmem:[%s2651_s13 + $0x48] sm:$0xff]  ;;  %v401_v7 = vadd.f32 %v338_v4, %v337_v2  ;;  %v343_v10 = vld [vmem:[%s2651_s13 + $0x30] sm:$0xff]  ;;  %s1949_s9 = scalar_lea.hbm %s4017_s5, %s2107_s26  ;;  %s1935_s21 = scalar_lea.sflag [#allocation4], %s2645_s7 }
  0x3a   : > { %v413_v8 = vadd.f32 %v2673_v6, %v2670_v5  ;;  %408 = vadd.xlane.f32.xlu1 %v407_v3  ;;  %v344_v11 = vld [vmem:[%s2651_s13 + $0x38] sm:$0xff]  ;;  %v347_v13 = vld [vmem:[%s2651_s13 + $0x50] sm:$0xff]  ;;  %v2684_v18 = vld [vmem:[%s2651_s13 + $0x60] sm:$0xff]  ;;  %s1952_s14 = sshll.u32 %s1949_s9, 4  ;;  %s2412_s6 = scalar_lea.hbm %s4017_s5, 1024  ;;  %s1953_s14 = int_to_ptr.hbm [resolvable:$true] %s1952_s14 }
  0x3b   : > { %402 = vadd.xlane.f32.xlu0 %v401_v7  ;;  %v340_v12 = vld [vmem:[%s2651_s13 + $0x18] sm:$0xff]  ;;  %v410_v15 = vadd.f32 %v344_v11, %v343_v10  ;;  %v2687_v19 = vld [vmem:[%s2651_s13 + $0x68] sm:$0xff]  ;;  %v2690_v20 = vld [vmem:[%s2651_s13 + $0x70] sm:$0xff]  ;;  %s2406_s17 = sshra.s32 %s1953_s14, 4  ;;  %s2407_s17 = int_to_ptr.hbm [resolvable:$true] %s2406_s17 }
  0x3c   : > { %414 = vadd.xlane.f32.xlu2 %v413_v8  ;;  %v348_v14 = vld [vmem:[%s2651_s13 + $0x58] sm:$0xff]  ;;  %v404_v16 = vadd.f32 %v340_v12, %v339_v9  ;;  %v419_v22 = vadd.f32 %v2687_v19, %v2684_v18  ;;  %v2720_v49 = vld [vmem:[%s2651_s13 + $0xa0] sm:$0xff]  ;;  %v2726_v53 = vld [vmem:[%s2651_s13 + $0xa8] sm:$0xff]  ;;  %s2408_s24 = scalar_lea.hbm %s2407_s17, 512  ;;  %p2413_p11 = scmp.lt.s32.totalorder %s2407_s17, %s4017_s5 }
  0x3d   : > { %v416_v17 = vadd.f32 %v348_v14, %v347_v13  ;;  %v2693_v21 = vld [vmem:[%s2651_s13 + $0x78] sm:$0xff]  ;;  %v2729_v54 = vld [vmem:[%s2651_s13 + $0x80] sm:$0xff]  ;;  %v2732_v55 = vld [vmem:[%s2651_s13 + $0x88] sm:$0xff]  ;;  %v431_v60 = vadd.f32 %v2726_v53, %v2720_v49  ;;  %p2409_p1 = scmp.ne.s32.totalorder %s2407_s17, %s2408_s24  ;;  %p2414_p12 = scmp.lt.s32.totalorder %s2412_s6, %s2408_s24 }
  0x3e   : > { %v422_v23 = vadd.f32 %v2693_v21, %v2690_v20  ;;  %v2207_v25 = vpop.eup %2206  ;;  %v425_v61 = vadd.f32 %v2732_v55, %v2729_v54  ;;  %v2784_v24 = vld [vmem:[%s2651_s13 + $0xb0] sm:$0xff] }
  0x3f   : > { %v498_v26 = vmul.f32 256.0, %v2207_v25  ;;  %vm502_vm0 = vweird.f32 %v2207_v25  ;;  %p2410_p4 = pnand %p2409_p1, %p2614_p3  ;;  %p2415_p13 = por %p2414_p12, %p2413_p11 }
  0x41   : > { %v499_v27 = vsub.f32 1.0, %v498_v26  ;;  %p2411_p8 = pneg %p2410_p4 }
  0x42   : > { %411 = vadd.xlane.f32.xlu1 %v410_v15 }
  0x43   : > { %405 = vadd.xlane.f32.xlu0 %v404_v16  ;;  %v500_v28 = vmul.f32 %v2207_v25, %v499_v27  ;;  %v1378_v27 = vld [vmem:[#allocation8 + $0xf0] sm:$0xff]  ;;  %p2416_p0 = pnand %p2415_p13, %p2411_p8 }
  0x44   : > { %417 = vadd.xlane.f32.xlu2 %v416_v17  ;;  %1418 = vmatpush.msra.mxu0 %v1378_v27  ;;  %v1402_v27 = vld [vmem:[#allocation8 + $0x1b0] sm:$0xff] }
  0x45   : > { %v501_v29 = vadd.f32 %v2207_v25, %v500_v28  ;;  %v1410_v28 = vld [vmem:[#allocation8 + $0x1f0] sm:$0xff] }
  0x46   : > { %1531 = vmatpush.msra.mxu1 %v1410_v28  ;;  %v1371_v28 = vld [vmem:[#allocation8 + $0xb8] sm:$0xff] }
  0x47   : > { %v2699_v30 = vsel %vm502_vm0, %v2207_v25, %v501_v29  ;;  %v2787_v25 = vld [vmem:[%s2651_s13 + $0xb8] sm:$0xff] }
  0x48   : > { %v1379_v29 = vld [vmem:[#allocation8 + $0xf8] sm:$0xff] }
  0x49   : > { %1644 = vmatpush.msra.mxu2 %v1379_v29  ;;  %v1403_v29 = vld [vmem:[#allocation8 + $0x1b8] sm:$0xff] }
  0x4b   : > { %420 = vadd.xlane.f32.xlu0 %v419_v22  ;;  %v2778_v22 = vld [vmem:[%s2651_s13 + $0xd0] sm:$0xff] }
  0x4c   : > { %423 = vadd.xlane.f32.xlu2 %v422_v23  ;;  %v2781_v23 = vld [vmem:[%s2651_s13 + $0xd8] sm:$0xff] }
  0xad   : > { %v409_v31 = vpop.xlane.xlu1 %408 }
  0xae   : > { %v506_v32 = vmul.f32 %v2699_v30, %v409_v31  ;;  %v403_v33 = vpop.xlane.xlu0 %402  ;;  %v1411_v31 = vld [vmem:[#allocation8 + $0x1f8] sm:$0xff] }
  0xaf   : > { %v415_v34 = vpop.xlane.xlu2 %414  ;;  %v504_v35 = vmul.f32 %v2699_v30, %v403_v33  ;;  %v1408_v33 = vld [vmem:[#allocation8 + $0x1e0] sm:$0xff]  ;;  %1757 = vmatpush.msra.mxu3 %v1411_v31 }
  0xb0   : > { %v2703_v36 = vsub.f32 %v341_v0, %v506_v32  ;;  %v2705_v37 = vsub.f32 %v342_v1, %v506_v32  ;;  %v508_v7 = vmul.f32 %v2699_v30, %v415_v34  ;;  %v1376_v32 = vld [vmem:[#allocation8 + $0xe0] sm:$0xff]  ;;  %v1377_v34 = vld [vmem:[#allocation8 + $0xe8] sm:$0xff]  ;;  %1532 = vmatpush.msra.mxu1 %v1408_v33 }
  0xb1   : > { %v2707_v38 = vsub.f32 %v337_v2, %v504_v35  ;;  %v2709_v39 = vsub.f32 %v338_v4, %v504_v35  ;;  %v1409_v35 = vld [vmem:[#allocation8 + $0x1e8] sm:$0xff]  ;;  %1419 = vmatpush.msra.mxu0 %v1376_v32  ;;  %1645 = vmatpush.msra.mxu2 %v1377_v34  ;;  %v1368_v31 = vld [vmem:[#allocation8 + $0xa0] sm:$0xff] }
  0xb2   : > { %v604_v40 = vmul.f32 %v2703_v36, %v2703_v36  ;;  %v605_v41 = vmul.f32 %v2705_v37, %v2705_v37  ;;  %1758 = vmatpush.msra.mxu3 %v1409_v35  ;;  %v1400_v32 = vld [vmem:[#allocation8 + $0x1a0] sm:$0xff]  ;;  %v1369_v33 = vld [vmem:[#allocation8 + $0xa8] sm:$0xff]  ;;  %v1366_v35 = vld [vmem:[#allocation8 + $0x90] sm:$0xff] }
  0xb3   : > { %v600_v42 = vmul.f32 %v2707_v38, %v2707_v38  ;;  %v601_v43 = vmul.f32 %v2709_v39, %v2709_v39  ;;  %v1401_v34 = vld [vmem:[#allocation8 + $0x1a8] sm:$0xff] }
  0xb4   : > { %v670_v44 = vadd.f32 %v605_v41, %v604_v40  ;;  %v440_v40 = vadd.f32 %v2781_v23, %v2778_v22  ;;  %v434_v41 = vadd.f32 %v2787_v25, %v2784_v24 }
  0xb5   : > { %v664_v45 = vadd.f32 %v601_v43, %v600_v42  ;;  %v412_v46 = vpop.xlane.xlu1 %411 }
  0xb6   : > { %v406_v47 = vpop.xlane.xlu0 %405  ;;  %671 = vadd.xlane.f32.xlu2 %v670_v44  ;;  %v507_v52 = vmul.f32 %v2699_v30, %v412_v46 }
  0xb7   : > { %v418_v48 = vpop.xlane.xlu2 %417  ;;  %v505_v50 = vmul.f32 %v2699_v30, %v406_v47  ;;  %665 = vadd.xlane.f32.xlu1 %v664_v45 }
  0xb8   : > { %v509_v51 = vmul.f32 %v2699_v30, %v418_v48  ;;  %v2746_v62 = vsub.f32 %v343_v10, %v507_v52  ;;  %v2748_v63 = vsub.f32 %v344_v11, %v507_v52  ;;  %v2764_v10 = vld [vmem:[%s2651_s13 + $0x90] sm:$0xff]  ;;  %v2767_v11 = vld [vmem:[%s2651_s13 + $0x98] sm:$0xff]  ;;  %v2810_v48 = vld [vmem:[%s2651_s13 + $0xc0] sm:$0xff] }
  0xb9   : > { %v2734_v56 = vsub.f32 %v339_v9, %v505_v50  ;;  %v2736_v57 = vsub.f32 %v340_v12, %v505_v50  ;;  %v428_v16 = vadd.f32 %v2767_v11, %v2764_v10 }
  0xba   : > { %v2738_v58 = vsub.f32 %v347_v13, %v509_v51  ;;  %v2740_v59 = vsub.f32 %v348_v14, %v509_v51  ;;  %v606_v8 = vmul.f32 %v2746_v62, %v2746_v62  ;;  %v607_v9 = vmul.f32 %v2748_v63, %v2748_v63 }
  0xbb   : > { %v602_v0 = vmul.f32 %v2734_v56, %v2734_v56  ;;  %v603_v1 = vmul.f32 %v2736_v57, %v2736_v57  ;;  %v2770_v13 = vsub.f32 %v2670_v5, %v508_v7  ;;  %v2773_v14 = vsub.f32 %v2673_v6, %v508_v7 }
  0xbc   : > { %v610_v3 = vmul.f32 %v2738_v58, %v2738_v58  ;;  %v611_v4 = vmul.f32 %v2740_v59, %v2740_v59  ;;  %v673_v15 = vadd.f32 %v607_v9, %v606_v8  ;;  %v1374_v8 = vld [vmem:[#allocation8 + $0xd0] sm:$0xff] }
  0xbd   : > { %v667_v2 = vadd.f32 %v603_v1, %v602_v0  ;;  %v608_v6 = vmul.f32 %v2770_v13, %v2770_v13  ;;  %v609_v26 = vmul.f32 %v2773_v14, %v2773_v14  ;;  %v2828_v1 = vld [vmem:[%s2651_s13 + $0xe0] sm:$0xff]  ;;  %v1406_v9 = vld [vmem:[#allocation8 + $0x1d0] sm:$0xff]  ;;  %1420 = vmatpush.msra.mxu0 %v1374_v8  ;;  %v1393_v8 = vld [vmem:[#allocation8 + $0x168] sm:$0xff] }
  0xbe   : > { %432 = vadd.xlane.f32.xlu2 %v431_v60  ;;  %v679_v12 = vadd.f32 %v611_v4, %v610_v3  ;;  %v421_v17 = vpop.xlane.xlu0 %420  ;;  %v2836_v3 = vld [vmem:[%s2651_s13 + $0xf0] sm:$0xff]  ;;  %v2839_v4 = vld [vmem:[%s2651_s13 + $0xf8] sm:$0xff]  ;;  %1533 = vmatpush.msra.mxu1 %v1406_v9 }
  0xbf   : > { %426 = vadd.xlane.f32.xlu1 %v425_v61  ;;  %668 = vadd.xlane.f32.xlu0 %v667_v2  ;;  %v510_v5 = vmul.f32 %v2699_v30, %v421_v17  ;;  %v676_v44 = vadd.f32 %v609_v26, %v608_v6  ;;  %v424_v45 = vpop.xlane.xlu2 %423  ;;  %v2831_v2 = vld [vmem:[%s2651_s13 + $0xe8] sm:$0xff]  ;;  %v446_v7 = vadd.f32 %v2839_v4, %v2836_v3  ;;  %v1370_v26 = vld [vmem:[#allocation8 + $0xb0] sm:$0xff] }
  0xc0   : > { %v511_v46 = vmul.f32 %v2699_v30, %v424_v45  ;;  %v1404_v17 = vld [vmem:[#allocation8 + $0x1c0] sm:$0xff]  ;;  %v1405_v6 = vld [vmem:[#allocation8 + $0x1c8] sm:$0xff]  ;;  %v1358_v9 = vld [vmem:[#allocation8 + $0x50] sm:$0xff] }
  0xc1   : > { %v2799_v42 = vsub.f32 %v2684_v18, %v510_v5  ;;  %v2802_v43 = vsub.f32 %v2687_v19, %v510_v5  ;;  %v2813_v19 = vld [vmem:[%s2651_s13 + $0xc8] sm:$0xff]  ;;  %1534 = vmatpush.msra.mxu1 %v1404_v17 }
  0xc2   : > { %v2816_v50 = vsub.f32 %v2690_v20, %v511_v46  ;;  %v2819_v51 = vsub.f32 %v2693_v21, %v511_v46  ;;  %v437_v52 = vadd.f32 %v2813_v19, %v2810_v48  ;;  %v443_v21 = vadd.f32 %v2831_v2, %v2828_v1  ;;  %v1373_v5 = vld [vmem:[#allocation8 + $0xc8] sm:$0xff]  ;;  %v1364_v45 = vld [vmem:[#allocation8 + $0x80] sm:$0xff] }
  0xc3   : > { %v612_v47 = vmul.f32 %v2799_v42, %v2799_v42  ;;  %v613_v18 = vmul.f32 %v2802_v43, %v2802_v43  ;;  %1535 = vmatpush.msra.mxu1 %v1402_v27  ;;  %v1396_v46 = vld [vmem:[#allocation8 + $0x180] sm:$0xff]  ;;  %v1354_v27 = vld [vmem:[#allocation8 + $0x30] sm:$0xff] }
  0xc4   : > { %v614_v61 = vmul.f32 %v2816_v50, %v2816_v50  ;;  %v615_v0 = vmul.f32 %v2819_v51, %v2819_v51  ;;  %v1356_v17 = vld [vmem:[#allocation8 + $0x40] sm:$0xff] }
  0xc5   : > { %v682_v60 = vadd.f32 %v613_v18, %v612_v47  ;;  %1536 = vmatpush.msra.mxu1 %v1400_v32  ;;  %v1365_v47 = vld [vmem:[#allocation8 + $0x88] sm:$0xff]  ;;  %v1352_v32 = vld [vmem:[#allocation8 + $0x20] sm:$0xff] }
  0xc6   : > { %680 = vadd.xlane.f32.xlu2 %v679_v12  ;;  %v685_v20 = vadd.f32 %v615_v0, %v614_v61  ;;  %v1375_v12 = vld [vmem:[#allocation8 + $0xd8] sm:$0xff]  ;;  %v1397_v18 = vld [vmem:[#allocation8 + $0x188] sm:$0xff] }
  0xc7   : > { %674 = vadd.xlane.f32.xlu1 %v673_v15  ;;  %429 = vadd.xlane.f32.xlu0 %v428_v16  ;;  %v1407_v15 = vld [vmem:[#allocation8 + $0x1d8] sm:$0xff]  ;;  %v1372_v16 = vld [vmem:[#allocation8 + $0xc0] sm:$0xff] }
  0xc8   : > { %1646 = vmatpush.msra.mxu2 %v1375_v12  ;;  %1759 = vmatpush.msra.mxu3 %v1407_v15  ;;  %v1363_v61 = vld [vmem:[#allocation8 + $0x78] sm:$0xff]  ;;  %v1390_v12 = vld [vmem:[#allocation8 + $0x150] sm:$0xff] }
  0xc9   : > { %1421 = vmatpush.msra.mxu0 %v1372_v16  ;;  %v1395_v0 = vld [vmem:[#allocation8 + $0x178] sm:$0xff] }
  0xca   : > { %1647 = vmatpush.msra.mxu2 %v1373_v5  ;;  %1760 = vmatpush.msra.mxu3 %v1405_v6  ;;  %v1359_v15 = vld [vmem:[#allocation8 + $0x58] sm:$0xff]  ;;  %v1388_v5 = vld [vmem:[#allocation8 + $0x140] sm:$0xff]  ;;  %v1357_v6 = vld [vmem:[#allocation8 + $0x48] sm:$0xff] }
  0xcb   : > { %1422 = vmatpush.msra.mxu0 %v1370_v26  ;;  %v1391_v16 = vld [vmem:[#allocation8 + $0x158] sm:$0xff]  ;;  %v1389_v26 = vld [vmem:[#allocation8 + $0x148] sm:$0xff] }
  0xcc   : > { %1648 = vmatpush.msra.mxu2 %v1371_v28  ;;  %1761 = vmatpush.msra.mxu3 %v1403_v29  ;;  %v1386_v28 = vld [vmem:[#allocation8 + $0x130] sm:$0xff]  ;;  %v1355_v29 = vld [vmem:[#allocation8 + $0x38] sm:$0xff] }
  0xcd   : > { %1423 = vmatpush.msra.mxu0 %v1368_v31  ;;  %v1387_v31 = vld [vmem:[#allocation8 + $0x138] sm:$0xff] }
  0xce   : > { %441 = vadd.xlane.f32.xlu2 %v440_v40  ;;  %1649 = vmatpush.msra.mxu2 %v1369_v33  ;;  %v1398_v40 = vld [vmem:[#allocation8 + $0x190] sm:$0xff]  ;;  %v1384_v33 = vld [vmem:[#allocation8 + $0x120] sm:$0xff] }
  0xcf   : > { %435 = vadd.xlane.f32.xlu1 %v434_v41  ;;  %677 = vadd.xlane.f32.xlu0 %v676_v44  ;;  %v1367_v41 = vld [vmem:[#allocation8 + $0x98] sm:$0xff] }
  0xd0   : > { %1762 = vmatpush.msra.mxu3 %v1401_v34  ;;  %1424 = vmatpush.msra.mxu0 %v1366_v35  ;;  %v1399_v44 = vld [vmem:[#allocation8 + $0x198] sm:$0xff]  ;;  %v1353_v34 = vld [vmem:[#allocation8 + $0x28] sm:$0xff] }
  0xd1   : > { %1537 = vmatpush.msra.mxu1 %v1398_v40  ;;  %1650 = vmatpush.msra.mxu2 %v1367_v41  ;;  %v1385_v35 = vld [vmem:[#allocation8 + $0x128] sm:$0xff]  ;;  %v1350_v40 = vld [vmem:[#allocation8 + $0x10] sm:$0xff] }
  0xd2   : > { %1763 = vmatpush.msra.mxu3 %v1399_v44  ;;  %1425 = vmatpush.msra.mxu0 %v1364_v45  ;;  %v1382_v41 = vld [vmem:[#allocation8 + $0x110] sm:$0xff]  ;;  %v1351_v44 = vld [vmem:[#allocation8 + $0x18] sm:$0xff] }
  0xd3   : > { %1538 = vmatpush.msra.mxu1 %v1396_v46  ;;  %1651 = vmatpush.msra.mxu2 %v1365_v47  ;;  %v1383_v45 = vld [vmem:[#allocation8 + $0x118] sm:$0xff]  ;;  %v1348_v46 = vld [vmem:[#allocation8] sm:$0xff] }
  0xd4   : > { %1764 = vmatpush.msra.mxu3 %v1397_v18  ;;  %v1380_v47 = vld [vmem:[#allocation8 + $0x100] sm:$0xff]  ;;  %v1349_v18 = vld [vmem:[#allocation8 + $0x8] sm:$0xff] }
  0xd5   : > { %1652 = vmatpush.msra.mxu2 %v1363_v61 }
  0xd6   : > { %1765 = vmatpush.msra.mxu3 %v1395_v0 }
  0xd7   : > { %438 = vadd.xlane.f32.xlu0 %v437_v52  ;;  %683 = vadd.xlane.f32.xlu1 %v682_v60  ;;  %v1362_v52 = vld [vmem:[#allocation8 + $0x70] sm:$0xff] }
  0xd8   : > { %v1394_v60 = vld [vmem:[#allocation8 + $0x170] sm:$0xff]  ;;  %1426 = vmatpush.msra.mxu0 %v1362_v52  ;;  %1766 = vmatpush.msra.mxu3 %v1393_v8  ;;  %v1381_v52 = vld [vmem:[#allocation8 + $0x108] sm:$0xff] }
  0xd9   : > { %1539 = vmatpush.msra.mxu1 %v1394_v60 }
  0xda   : > { %1767 = vmatpush.msra.mxu3 %v1391_v16 }
  0xdc   : > { %1768 = vmatpush.msra.mxu3 %v1389_v26 }
  0xde   : > { %1769 = vmatpush.msra.mxu3 %v1387_v31 }
  0xdf   : > { %686 = vadd.xlane.f32.xlu0 %v685_v20  ;;  %444 = vadd.xlane.f32.xlu1 %v443_v21  ;;  %v1360_v20 = vld [vmem:[#allocation8 + $0x60] sm:$0xff] }
  0xe0   : > { %v1392_v21 = vld [vmem:[#allocation8 + $0x160] sm:$0xff]  ;;  %1427 = vmatpush.msra.mxu0 %v1360_v20  ;;  %1770 = vmatpush.msra.mxu3 %v1385_v35 }
  0xe1   : > { %1540 = vmatpush.msra.mxu1 %v1392_v21 }
  0xe2   : > { %1428 = vmatpush.msra.mxu0 %v1358_v9  ;;  %1771 = vmatpush.msra.mxu3 %v1383_v45 }
  0xe3   : > { %1541 = vmatpush.msra.mxu1 %v1390_v12 }
  0xe4   : > { %1429 = vmatpush.msra.mxu0 %v1356_v17  ;;  %1772 = vmatpush.msra.mxu3 %v1381_v52  ;;  %v2883_v52 = vld [vmem:[%s2651_s13 + $0x108] sm:$0xff] }
  0xe5   : > { %1542 = vmatpush.msra.mxu1 %v1388_v5 }
  0xe6   : > { %1430 = vmatpush.msra.mxu0 %v1354_v27 }
  0xe7   : > { %447 = vadd.xlane.f32.xlu0 %v446_v7  ;;  %v1361_v7 = vld [vmem:[#allocation8 + $0x68] sm:$0xff]  ;;  %1543 = vmatpush.msra.mxu1 %v1386_v28 }
  0xe8   : > { %1653 = vmatpush.msra.mxu2 %v1361_v7  ;;  %1431 = vmatpush.msra.mxu0 %v1352_v32 }
  0xe9   : > { %1544 = vmatpush.msra.mxu1 %v1384_v33 }
  0xea   : > { %1654 = vmatpush.msra.mxu2 %v1359_v15  ;;  %1432 = vmatpush.msra.mxu0 %v1350_v40 }
  0xeb   : > { %1545 = vmatpush.msra.mxu1 %v1382_v41 }
  0xec   : > { %1655 = vmatpush.msra.mxu2 %v1357_v6  ;;  %1433 = vmatpush.msra.mxu0 %v1348_v46 }
  0xed   : > { %1546 = vmatpush.msra.mxu1 %v1380_v47 }
  0xee   : > { %1656 = vmatpush.msra.mxu2 %v1355_v29 }
  0xf0   : > { %1657 = vmatpush.msra.mxu2 %v1353_v34 }
  0xf2   : > { %1658 = vmatpush.msra.mxu2 %v1351_v44 }
  0xf4   : > { %1659 = vmatpush.msra.mxu2 %v1349_v18  ;;  %v2880_v18 = vld [vmem:[%s2651_s13 + $0x100] sm:$0xff] }
 0x129   : > { %v672_v60 = vpop.xlane.xlu2 %671 }
 0x12a   : > { %v762_v61 = vmul.f32 %v672_v60, %v2699_v30  ;;  %v666_v0 = vpop.xlane.xlu1 %665 }
 0x12b   : > { %v760_v20 = vmul.f32 %v666_v0, %v2699_v30 }
 0x12c   : > { %v2845_v21 = vadd.f32 1e-05, %v762_v61 }
 0x12d   : > { %v792_v7 = vadd.f32 1e-05, %v760_v20  ;;  %v2888_v20 = vld [vmem:[%s2651_s13 + $0x120] sm:$0xff] }
 0x12e   : > { %2208 = vrsqrt.f32 %v2845_v21  ;;  %vm850_vm4 = vweird.f32 %v2845_v21 }
 0x12f   : > { %2210 = vrsqrt.f32 %v792_v7  ;;  %vm830_vm2 = vweird.f32 %v792_v7 }
 0x131   : > { %v433_v8 = vpop.xlane.xlu2 %432 }
 0x132   : > { %v514_v9 = vmul.f32 %v2699_v30, %v433_v8  ;;  %v427_v12 = vpop.xlane.xlu1 %426  ;;  %v669_v15 = vpop.xlane.xlu0 %668  ;;  %v2891_v8 = vld [vmem:[%s2651_s13 + $0x128] sm:$0xff] }
 0x133   : > { %v512_v16 = vmul.f32 %v2699_v30, %v427_v12  ;;  %v761_v17 = vmul.f32 %v669_v15, %v2699_v30 }
 0x134   : > { %v2851_v5 = vpop.eup %2208  ;;  %v2854_v6 = vsub.f32 %v2720_v49, %v514_v9  ;;  %v2857_v26 = vsub.f32 %v2726_v53, %v514_v9  ;;  %v1208_v9 = vld [vmem:[#allocation5] sm:$0x3] }
 0x135   : > { %v2211_v27 = vpop.eup %2210  ;;  %v845_v28 = vmul.f32 %v2851_v5, %v2845_v21  ;;  %v2862_v29 = vsub.f32 %v2729_v54, %v512_v16  ;;  %v2865_v31 = vsub.f32 %v2732_v55, %v512_v16  ;;  %v2867_v33 = vadd.f32 1e-05, %v761_v17 }
 0x136   : > { %4048 = vst [vmem:[#allocation15_spill] sm:$0xff] %v2857_v26  ;;  %v825_v32 = vmul.f32 %v2211_v27, %v792_v7  ;;  %v620_v49 = vmul.f32 %v2854_v6, %v2854_v6  ;;  %v621_v55 = vmul.f32 %v2857_v26, %v2857_v26  ;;  %vm831_vm1 = vweird.f32 %v2211_v27 }
 0x137   : > { %v846_v53 = vmul.f32 %v2851_v5, %v845_v28  ;;  %v616_v34 = vmul.f32 %v2862_v29, %v2862_v29  ;;  %v617_v54 = vmul.f32 %v2865_v31, %v2865_v31  ;;  %2212 = vrsqrt.f32 %v2867_v33  ;;  %vm832_vm3 = vmor %vm830_vm2, %vm831_vm1 }
 0x138   : > { %v826_v35 = vmul.f32 %v2211_v27, %v825_v32  ;;  %v694_v44 = vadd.f32 %v621_v55, %v620_v49  ;;  %v449_v32 = vadd.f32 %v2883_v52, %v2880_v18  ;;  %v1278_v55 = vld [vmem:[#allocation7] sm:$0x3]  ;;  %vm851_vm5 = vweird.f32 %v2851_v5 }
 0x139   : > { %v681_v40 = vpop.xlane.xlu2 %680  ;;  %v688_v41 = vadd.f32 %v617_v54, %v616_v34  ;;  %v847_v60 = vmul.f32 0.5, %v846_v53  ;;  %v455_v34 = vadd.f32 %v2891_v8, %v2888_v20  ;;  %v2908_v54 = vperm.slane %v1208_v9, 0  ;;  %vm2966_vm7 = vmor %vm850_vm4, %vm851_vm5 }
 0x13a   : > { %v827_v45 = vmul.f32 0.5, %v826_v35  ;;  %v675_v46 = vpop.xlane.xlu1 %674  ;;  %v430_v47 = vpop.xlane.xlu0 %429  ;;  %695 = vadd.xlane.f32.xlu0 %v694_v44  ;;  %v765_v15 = vmul.f32 %v681_v40, %v2699_v30  ;;  %v2928_v26 = vperm.slane %v1278_v55, 1  ;;  %vm840_vm8 = vweird.f32 %v2867_v33 }
 0x13b   : > { %v763_v61 = vmul.f32 %v675_v46, %v2699_v30  ;;  %v513_v0 = vmul.f32 %v2699_v30, %v430_v47  ;;  %689 = vadd.xlane.f32.xlu2 %v688_v41  ;;  %v848_v35 = vsub.f32 1.5, %v847_v60  ;;  %v2923_v60 = vperm.slane %v1278_v55, 0  ;;  %v2938_v55 = vld [vmem:[%s2651_s13 + $0x110] sm:$0xff] }
 0x13c   : > { %v828_v12 = vsub.f32 1.5, %v827_v45  ;;  %v2915_v40 = vadd.f32 1e-05, %v765_v15 }
 0x13d   : > { %v2894_v16 = vadd.f32 1e-05, %v763_v61  ;;  %v2897_v17 = vsub.f32 %v2764_v10, %v513_v0  ;;  %v2900_v28 = vsub.f32 %v2767_v11, %v513_v0  ;;  %v2904_v49 = vpop.eup %2212  ;;  %v2913_v11 = vperm.slane %v1208_v9, 1 }
 0x13e   : > { %v829_v53 = vmul.f32 %v2211_v27, %v828_v12  ;;  %v835_v10 = vmul.f32 %v2904_v49, %v2867_v33  ;;  %vm841_vm6 = vweird.f32 %v2904_v49  ;;  %vm880_vm0 = vweird.f32 %v2915_v40 }
 0x13f   : > { %2214 = vrsqrt.f32 %v2894_v16  ;;  %v618_v7 = vmul.f32 %v2897_v17, %v2897_v17  ;;  %v619_v41 = vmul.f32 %v2900_v28, %v2900_v28  ;;  %vm842_vm9 = vmor %vm840_vm8, %vm841_vm6  ;;  %vm860_vm10 = vweird.f32 %v2894_v16 }
 0x140   : > { %v833_v44 = vsel %vm832_vm3, %v2211_v27, %v829_v53  ;;  %v836_v45 = vmul.f32 %v2904_v49, %v835_v10  ;;  %v849_v10 = vmul.f32 %v2851_v5, %v848_v35  ;;  %2216 = vrsqrt.f32 %v2915_v40 }
 0x141   : > { %v442_v46 = vpop.xlane.xlu2 %441  ;;  %v1144_v47 = vmul.f32 %v833_v44, %v2707_v38  ;;  %v1145_v61 = vmul.f32 %v833_v44, %v2709_v39  ;;  %v691_v15 = vadd.f32 %v619_v41, %v618_v7  ;;  %v2941_v41 = vld [vmem:[%s2651_s13 + $0x118] sm:$0xff] }
 0x142   : > { %v517_v0 = vmul.f32 %v2699_v30, %v442_v46  ;;  %v436_v9 = vpop.xlane.xlu1 %435  ;;  %v678_v12 = vpop.xlane.xlu0 %677  ;;  %v837_v27 = vmul.f32 0.5, %v836_v45  ;;  %456 = vadd.xlane.f32.xlu0 %v455_v34 }
 0x143   : > { %v515_v53 = vmul.f32 %v2699_v30, %v436_v9  ;;  %v764_v38 = vmul.f32 %v678_v12, %v2699_v30  ;;  %450 = vadd.xlane.f32.xlu2 %v449_v32  ;;  %v1214_v39 = vmul.f32 %v2908_v54, %v1144_v47  ;;  %692 = vadd.xlane.f32.xlu1 %v691_v15 }
 0x144   : > { %v1215_v7 = vmul.f32 %v2913_v11, %v1145_v61  ;;  %v838_v45 = vsub.f32 1.5, %v837_v27  ;;  %v2946_v32 = vsub.f32 %v2778_v22, %v517_v0  ;;  %v2949_v34 = vsub.f32 %v2781_v23, %v517_v0  ;;  %v3006_v22 = vld [vmem:[%s2651_s13 + $0x130] sm:$0xff] }
 0x145   : > { %v2943_v44 = vpop.eup %2214  ;;  %v2952_v35 = vsub.f32 %v2784_v24, %v515_v53  ;;  %v2958_v47 = vsub.f32 %v2787_v25, %v515_v53  ;;  %v2960_v61 = vadd.f32 1e-05, %v764_v38  ;;  %v1284_v24 = vadd.f32 %v2923_v60, %v1214_v39 }
 0x146   : > { %4049 = vst [vmem:[#allocation16_spill] sm:$0xff] %v2946_v32  ;;  %v855_v46 = vmul.f32 %v2943_v44, %v2894_v16  ;;  %v839_v23 = vmul.f32 %v2904_v49, %v838_v45  ;;  %v1285_v0 = vadd.f32 %v2928_v26, %v1215_v7  ;;  %v452_v25 = vadd.f32 %v2941_v41, %v2938_v55  ;;  %v2986_v33 = vpop.eup %2216 }
 0x147   : > { %4050 = vst [vmem:[#allocation17_spill] sm:$0xff] %v2949_v34  ;;  %2218 = vrsqrt.f32 %v2960_v61  ;;  %v622_v21 = vmul.f32 %v2952_v35, %v2952_v35  ;;  %1434 = vmatmul.f32.vlgmr.msra.gmra.mxu0 %v1284_v24  ;;  %v623_v12 = vmul.f32 %v2958_v47, %v2958_v47  ;;  %v626_v15 = vmul.f32 %v2946_v32, %v2946_v32 }
 0x148   : > { %4051 = vst [vmem:[#allocation18_spill] sm:$0xff] %v2958_v47  ;;  %v856_v9 = vmul.f32 %v2943_v44, %v855_v46  ;;  %1547 = vmatmul.f32.vlgmr.msra.gmra.mxu1 %v1285_v0  ;;  %v627_v27 = vmul.f32 %v2949_v34, %v2949_v34  ;;  %1660 = vmatmul.f32.vlgmr.msra.gmra.mxu2 %v1284_v24  ;;  %vm861_vm11 = vweird.f32 %v2943_v44  ;;  %vm870_vm13 = vweird.f32 %v2960_v61 }
 0x149   : > { %1773 = vmatmul.f32.vlgmr.msra.gmra.mxu3 %v1285_v0  ;;  %v843_v7 = vsel %vm842_vm9, %v2904_v49, %v839_v23  ;;  %v853_v45 = vsel %vm2966_vm7, %v2851_v5, %v849_v10  ;;  %v697_v32 = vadd.f32 %v623_v12, %v622_v21  ;;  %v3019_v12 = vld [vmem:[%s2651_s13 + $0x150] sm:$0xff]  ;;  %vm862_vm12 = vmor %vm860_vm10, %vm861_vm11  ;;  %vm881_vm1 = vweird.f32 %v2986_v33 }
 0x14a   : > { %v857_v53 = vmul.f32 0.5, %v856_v9  ;;  %v684_v38 = vpop.xlane.xlu1 %683  ;;  %v439_v39 = vpop.xlane.xlu0 %438  ;;  %v703_v24 = vadd.f32 %v627_v27, %v626_v15  ;;  %v1146_v0 = vmul.f32 %v843_v7, %v2734_v56  ;;  %v1147_v49 = vmul.f32 %v843_v7, %v2736_v57  ;;  %vm882_vm2 = vmor %vm880_vm0, %vm881_vm1 }
 0x14b   : > { %v766_v46 = vmul.f32 %v684_v38, %v2699_v30  ;;  %v516_v34 = vmul.f32 %v2699_v30, %v439_v39  ;;  %453 = vadd.xlane.f32.xlu1 %v452_v25  ;;  %698 = vadd.xlane.f32.xlu2 %v697_v32  ;;  %v1148_v9 = vmul.f32 %v853_v45, %v2703_v36 }
 0x14c   : > { %v858_v47 = vsub.f32 1.5, %v857_v53  ;;  %v875_v56 = vmul.f32 %v2986_v33, %v2915_v40  ;;  %704 = vadd.xlane.f32.xlu0 %v703_v24  ;;  %v1216_v57 = vmul.f32 %v2908_v54, %v1146_v0  ;;  %v1217_v25 = vmul.f32 %v2913_v11, %v1147_v49 }
 0x14d   : > { %v2997_v23 = vadd.f32 1e-05, %v766_v46  ;;  %v3000_v5 = vsub.f32 %v2810_v48, %v516_v34  ;;  %v3003_v10 = vsub.f32 %v2813_v19, %v516_v34  ;;  %v3009_v21 = vpop.eup %2218  ;;  %v3016_v48 = vld [vmem:[%s2651_s13 + $0x138] sm:$0xff]  ;;  %v1149_v32 = vmul.f32 %v853_v45, %v2705_v37 }
 0x14e   : > { %v3022_v19 = vld [vmem:[%s2651_s13 + $0x158] sm:$0xff]  ;;  %v859_v36 = vmul.f32 %v2943_v44, %v858_v47  ;;  %v865_v34 = vmul.f32 %v3009_v21, %v2960_v61  ;;  %v1286_v15 = vadd.f32 %v2923_v60, %v1216_v57  ;;  %v1287_v27 = vadd.f32 %v2928_v26, %v1217_v25 }
 0x14f   : > { %4054 = vst [vmem:[#allocation19_spill] sm:$0xff] %v3003_v10  ;;  %2220 = vrsqrt.f32 %v2997_v23  ;;  %v624_v53 = vmul.f32 %v3000_v5, %v3000_v5  ;;  %v625_v38 = vmul.f32 %v3003_v10, %v3003_v10  ;;  %v458_v47 = vadd.f32 %v3016_v48, %v3006_v22  ;;  %v3054_v10 = vld [vmem:[%s2651_s13 + $0x148] sm:$0xff] }
 0x150   : > { %v866_v37 = vmul.f32 %v3009_v21, %v865_v34  ;;  %v464_v39 = vadd.f32 %v3022_v19, %v3019_v12  ;;  %v876_v7 = vmul.f32 %v2986_v33, %v875_v56  ;;  %1437 = vmatmul.f32.gmra.mxu0 %v1286_v15  ;;  %1550 = vmatmul.f32.gmra.mxu1 %v1287_v27  ;;  %v3051_v34 = vld [vmem:[%s2651_s13 + $0x140] sm:$0xff]  ;;  %vm871_vm14 = vweird.f32 %v3009_v21 }
 0x151   : > { %v700_v24 = vadd.f32 %v625_v38, %v624_v53  ;;  %v1218_v0 = vmul.f32 %v2908_v54, %v1148_v9  ;;  %1663 = vmatmul.f32.gmra.mxu2 %v1286_v15  ;;  %1776 = vmatmul.f32.gmra.mxu3 %v1287_v27  ;;  %v1219_v56 = vmul.f32 %v2913_v11, %v1149_v32  ;;  %vm872_vm15 = vmor %vm870_vm13, %vm871_vm14  ;;  %vm890_vm3 = vweird.f32 %v2997_v23 }
 0x152   : > { %v445_v45 = vpop.xlane.xlu1 %444  ;;  %v687_v46 = vpop.xlane.xlu0 %686  ;;  %v867_v49 = vmul.f32 0.5, %v866_v37  ;;  %v863_v9 = vsel %vm862_vm12, %v2943_v44, %v859_v36  ;;  %v461_v32 = vadd.f32 %v3054_v10, %v3051_v34  ;;  %v877_v37 = vmul.f32 0.5, %v876_v7 }
 0x153   : > { %v518_v57 = vmul.f32 %v2699_v30, %v445_v45  ;;  %v767_v25 = vmul.f32 %v687_v46, %v2699_v30  ;;  %701 = vadd.xlane.f32.xlu1 %v700_v24  ;;  %459 = vadd.xlane.f32.xlu2 %v458_v47  ;;  %v1288_v45 = vadd.f32 %v2923_v60, %v1218_v0 }
 0x154   : > { %v868_v16 = vsub.f32 1.5, %v867_v49  ;;  %465 = vadd.xlane.f32.xlu0 %v464_v39  ;;  %v1289_v44 = vadd.f32 %v2928_v26, %v1219_v56  ;;  %v1151_v47 = vmul.f32 %v863_v9, %v2748_v63  ;;  %v878_v0 = vsub.f32 1.5, %v877_v37 }
 0x155   : > { %v3057_v53 = vpop.eup %2220  ;;  %v3060_v38 = vsub.f32 %v2828_v1, %v518_v57  ;;  %v3063_v15 = vsub.f32 %v2831_v2, %v518_v57  ;;  %v3065_v27 = vadd.f32 1e-05, %v767_v25  ;;  %v1150_v2 = vmul.f32 %v863_v9, %v2746_v62 }
 0x156   : > { %v869_v39 = vmul.f32 %v3009_v21, %v868_v16  ;;  %v885_v7 = vmul.f32 %v3057_v53, %v2997_v23  ;;  %v1221_v61 = vmul.f32 %v2913_v11, %v1151_v47  ;;  %v3098_v16 = vld [vmem:[%s2651_s13 + $0x160] sm:$0xff]  ;;  %v879_v37 = vmul.f32 %v2986_v33, %v878_v0 }
 0x157   : > { %v628_v36 = vmul.f32 %v3060_v38, %v3060_v38  ;;  %2222 = vrsqrt.f32 %v3065_v27  ;;  %v629_v1 = vmul.f32 %v3063_v15, %v3063_v15  ;;  %v1220_v63 = vmul.f32 %v2908_v54, %v1150_v2 }
 0x158   : > { %1440 = vmatmul.f32.gmra.mxu0 %v1288_v45  ;;  %1553 = vmatmul.f32.gmra.mxu1 %v1289_v44  ;;  %v886_v49 = vmul.f32 %v3057_v53, %v885_v7  ;;  %v873_v56 = vsel %vm872_vm15, %v3009_v21, %v869_v39  ;;  %v3122_v7 = vld [vmem:[%s2651_s13 + $0x170] sm:$0xff]  ;;  %v883_v40 = vsel %vm882_vm2, %v2986_v33, %v879_v37  ;;  %vm891_vm4 = vweird.f32 %v3057_v53 }
 0x159   : > { %v706_v24 = vadd.f32 %v629_v1, %v628_v36  ;;  %1666 = vmatmul.f32.gmra.mxu2 %v1288_v45  ;;  %1779 = vmatmul.f32.gmra.mxu3 %v1289_v44  ;;  %v1290_v21 = vadd.f32 %v2923_v60, %v1220_v63  ;;  %v1291_v45 = vadd.f32 %v2928_v26, %v1221_v61  ;;  %vm892_vm5 = vmor %vm890_vm3, %vm891_vm4  ;;  %vm900_vm6 = vweird.f32 %v3065_v27 }
 0x15a   : > { %v448_v46 = vpop.xlane.xlu0 %447  ;;  %v1152_v44 = vmul.f32 %v873_v56, %v2770_v13  ;;  %v1153_v36 = vmul.f32 %v873_v56, %v2773_v14  ;;  %v887_v1 = vmul.f32 0.5, %v886_v49  ;;  %v1154_v49 = vmul.f32 %v883_v40, %v2738_v58 }
 0x15b   : > { %v519_v62 = vmul.f32 %v2699_v30, %v448_v46  ;;  %462 = vadd.xlane.f32.xlu1 %v461_v32  ;;  %707 = vadd.xlane.f32.xlu2 %v706_v24  ;;  %v3101_v32 = vld [vmem:[%s2651_s13 + $0x168] sm:$0xff]  ;;  %v3125_v46 = vld [vmem:[%s2651_s13 + $0x178] sm:$0xff]  ;;  %v1155_v56 = vmul.f32 %v883_v40, %v2740_v59 }
 0x15c   : > { %v467_v47 = vadd.f32 %v3101_v32, %v3098_v16  ;;  %v1222_v13 = vmul.f32 %v2908_v54, %v1152_v44  ;;  %v1223_v14 = vmul.f32 %v2913_v11, %v1153_v36  ;;  %v888_v24 = vsub.f32 1.5, %v887_v1 }
 0x15d   : > { %v3088_v57 = vsub.f32 %v2836_v3, %v519_v62  ;;  %v3091_v25 = vsub.f32 %v2839_v4, %v519_v62  ;;  %v3094_v9 = vpop.eup %2222  ;;  %v470_v62 = vadd.f32 %v3125_v46, %v3122_v7  ;;  %v1224_v33 = vmul.f32 %v2908_v54, %v1154_v49 }
 0x15e   : > { %v895_v2 = vmul.f32 %v3094_v9, %v3065_v27  ;;  %v1292_v63 = vadd.f32 %v2923_v60, %v1222_v13  ;;  %v1293_v61 = vadd.f32 %v2928_v26, %v1223_v14  ;;  %v1225_v23 = vmul.f32 %v2913_v11, %v1155_v56 }
 0x15f   : > { %v630_v3 = vmul.f32 %v3088_v57, %v3088_v57  ;;  %v631_v4 = vmul.f32 %v3091_v25, %v3091_v25  ;;  %vm901_vm7 = vweird.f32 %v3094_v9  ;;  %v1294_v58 = vadd.f32 %v2923_v60, %v1224_v33 }
 0x160   : > { %1443 = vmatmul.f32.gmra.mxu0 %v1290_v21  ;;  %1556 = vmatmul.f32.gmra.mxu1 %v1291_v45  ;;  %v896_v0 = vmul.f32 %v3094_v9, %v895_v2  ;;  %v1295_v59 = vadd.f32 %v2928_v26, %v1225_v23  ;;  %vm902_vm8 = vmor %vm900_vm6, %vm901_vm7 }
 0x161   : > { %v709_v39 = vadd.f32 %v631_v4, %v630_v3  ;;  %1669 = vmatmul.f32.gmra.mxu2 %v1290_v21  ;;  %1782 = vmatmul.f32.gmra.mxu3 %v1291_v45  ;;  %v889_v3 = vmul.f32 %v3057_v53, %v888_v24 }
 0x162   : > { %v897_v4 = vmul.f32 0.5, %v896_v0 }
 0x163   : > { %710 = vadd.xlane.f32.xlu1 %v709_v39  ;;  %468 = vadd.xlane.f32.xlu2 %v467_v47  ;;  %v893_v21 = vsel %vm892_vm5, %v3057_v53, %v889_v3 }
 0x164   : > { %v898_v37 = vsub.f32 1.5, %v897_v4  ;;  %v1156_v45 = vmul.f32 %v893_v21, %v2799_v42  ;;  %v1157_v44 = vmul.f32 %v893_v21, %v2802_v43 }
 0x166   : > { %v899_v36 = vmul.f32 %v3094_v9, %v898_v37  ;;  %v1226_v53 = vmul.f32 %v2908_v54, %v1156_v45  ;;  %v1227_v27 = vmul.f32 %v2913_v11, %v1157_v44 }
 0x168   : > { %1446 = vmatmul.f32.gmra.mxu0 %v1292_v63  ;;  %1559 = vmatmul.f32.gmra.mxu1 %v1293_v61  ;;  %v903_v1 = vsel %vm902_vm8, %v3094_v9, %v899_v36  ;;  %v1296_v2 = vadd.f32 %v2923_v60, %v1226_v53  ;;  %v1297_v47 = vadd.f32 %v2928_v26, %v1227_v27 }
 0x169   : > { %1672 = vmatmul.f32.gmra.mxu2 %v1292_v63  ;;  %1785 = vmatmul.f32.gmra.mxu3 %v1293_v61  ;;  %v1158_v42 = vmul.f32 %v903_v1, %v2816_v50  ;;  %v1159_v43 = vmul.f32 %v903_v1, %v2819_v51 }
 0x16b   : > { %471 = vadd.xlane.f32.xlu1 %v470_v62  ;;  %v1228_v39 = vmul.f32 %v2908_v54, %v1158_v42  ;;  %v1229_v13 = vmul.f32 %v2913_v11, %v1159_v43  ;;  %v3198_v43 = vld [vmem:[%s2651_s13 + $0x180] sm:$0xff] }
 0x16d   : > { %v1298_v14 = vadd.f32 %v2923_v60, %v1228_v39  ;;  %v1299_v9 = vadd.f32 %v2928_v26, %v1229_v13 }
 0x170   : > { %1449 = vmatmul.f32.gmra.mxu0 %v1294_v58  ;;  %1562 = vmatmul.f32.gmra.mxu1 %v1295_v59 }
 0x171   : > { %1675 = vmatmul.f32.gmra.mxu2 %v1294_v58  ;;  %1788 = vmatmul.f32.gmra.mxu3 %v1295_v59 }
 0x178   : > { %1452 = vmatmul.f32.gmra.mxu0 %v1296_v2  ;;  %1565 = vmatmul.f32.gmra.mxu1 %v1297_v47 }
 0x179   : > { %1678 = vmatmul.f32.gmra.mxu2 %v1296_v2  ;;  %1791 = vmatmul.f32.gmra.mxu3 %v1297_v47  ;;  %v1412_v2 = vld [vmem:[%s4016_s4] sm:$0x3] }
 0x180   : > { %1455 = vmatmul.f32.gmra.mxu0 %v1298_v14  ;;  %1568 = vmatmul.f32.gmra.mxu1 %v1299_v9 }
 0x181   : > { %1681 = vmatmul.f32.gmra.mxu2 %v1298_v14  ;;  %1794 = vmatmul.f32.gmra.mxu3 %v1299_v9 }
 0x1ad   : > { %v696_v50 = vpop.xlane.xlu0 %695 }
 0x1ae   : > { %v690_v24 = vpop.xlane.xlu2 %689  ;;  %v770_v0 = vmul.f32 %v696_v50, %v2699_v30  ;;  %v3206_v50 = vld [vmem:[%s2651_s13 + $0x1a0] sm:$0xff] }
 0x1af   : > { %v768_v51 = vmul.f32 %v690_v24, %v2699_v30  ;;  %v3203_v24 = vld [vmem:[%s2651_s13 + $0x188] sm:$0xff] }
 0x1b0   : > { %v3161_v62 = vadd.f32 1e-05, %v770_v0 }
 0x1b1   : > { %v800_v40 = vadd.f32 1e-05, %v768_v51  ;;  %v3209_v51 = vld [vmem:[%s2651_s13 + $0x1a8] sm:$0xff] }
 0x1b2   : > { %vm930_vm12 = vweird.f32 %v3161_v62 }
 0x1b3   : > { %2224 = vrsqrt.f32 %v800_v40  ;;  %vm910_vm10 = vweird.f32 %v800_v40 }
 0x1b4   : > { %2226 = vrsqrt.f32 %v3161_v62 }
 0x1b5   : > { %v457_v61 = vpop.xlane.xlu0 %456 }
 0x1b6   : > { %v451_v63 = vpop.xlane.xlu2 %450  ;;  %v693_v56 = vpop.xlane.xlu1 %692  ;;  %v522_v3 = vmul.f32 %v2699_v30, %v457_v61  ;;  %v3212_v61 = vperm.slane %v1412_v2, 0 }
 0x1b7   : > { %v520_v49 = vmul.f32 %v2699_v30, %v451_v63  ;;  %v769_v4 = vmul.f32 %v693_v56, %v2699_v30 }
 0x1b8   : > { %v3174_v21 = vsub.f32 %v2888_v20, %v522_v3  ;;  %v3177_v58 = vsub.f32 %v2891_v8, %v522_v3 }
 0x1b9   : > { %v2225_v33 = vpop.eup %2224  ;;  %v3168_v23 = vsub.f32 %v2880_v18, %v520_v49  ;;  %v3171_v37 = vsub.f32 %v2883_v52, %v520_v49  ;;  %v3181_v44 = vadd.f32 1e-05, %v769_v4 }
 0x1ba   : > { %4055 = vst [vmem:[#allocation20_spill] sm:$0xff] %v3174_v21  ;;  %v3179_v59 = vpop.eup %2226  ;;  %v905_v45 = vmul.f32 %v2225_v33, %v800_v40  ;;  %v636_v8 = vmul.f32 %v3174_v21, %v3174_v21  ;;  %v637_v27 = vmul.f32 %v3177_v58, %v3177_v58  ;;  %vm911_vm9 = vweird.f32 %v2225_v33 }
 0x1bb   : > { %4056 = vst [vmem:[#allocation21_spill] sm:$0xff] %v3177_v58  ;;  %v632_v36 = vmul.f32 %v3168_v23, %v3168_v23  ;;  %v633_v18 = vmul.f32 %v3171_v37, %v3171_v37  ;;  %v925_v20 = vmul.f32 %v3179_v59, %v3161_v62  ;;  %2228 = vrsqrt.f32 %v3181_v44  ;;  %vm912_vm11 = vmor %vm910_vm10, %vm911_vm9 }
 0x1bc   : > { %v906_v52 = vmul.f32 %v2225_v33, %v905_v45  ;;  %v718_v42 = vadd.f32 %v637_v27, %v636_v8  ;;  %v3238_v27 = vperm.slane %v1412_v2, 1  ;;  %vm931_vm13 = vweird.f32 %v3179_v59 }
 0x1bd   : > { %v712_v53 = vadd.f32 %v633_v18, %v632_v36  ;;  %v926_v13 = vmul.f32 %v3179_v59, %v925_v20  ;;  %v473_v18 = vadd.f32 %v3203_v24, %v3198_v43  ;;  %vm3294_vm15 = vmor %vm930_vm12, %vm931_vm13  ;;  %vm920_vm0 = vweird.f32 %v3181_v44 }
 0x1be   : > { %v907_v1 = vmul.f32 0.5, %v906_v52  ;;  %v454_v47 = vpop.xlane.xlu1 %453  ;;  %v699_v14 = vpop.xlane.xlu2 %698  ;;  %719 = vadd.xlane.f32.xlu1 %v718_v42  ;;  %v479_v52 = vadd.f32 %v3209_v51, %v3206_v50 }
 0x1bf   : > { %713 = vadd.xlane.f32.xlu0 %v712_v53  ;;  %v521_v9 = vmul.f32 %v2699_v30, %v454_v47  ;;  %v771_v0 = vmul.f32 %v699_v14, %v2699_v30  ;;  %v705_v63 = vpop.xlane.xlu0 %704 }
 0x1c0   : > { %v908_v39 = vsub.f32 1.5, %v907_v1  ;;  %v773_v45 = vmul.f32 %v705_v63, %v2699_v30 }
 0x1c1   : > { %v3214_v49 = vpop.eup %2228  ;;  %v3217_v3 = vsub.f32 %v2938_v55, %v521_v9  ;;  %v3220_v4 = vsub.f32 %v2941_v41, %v521_v9  ;;  %v3226_v36 = vadd.f32 1e-05, %v771_v0  ;;  %v927_v55 = vmul.f32 0.5, %v926_v13 }
 0x1c2   : > { %v909_v56 = vmul.f32 %v2225_v33, %v908_v39  ;;  %v915_v40 = vmul.f32 %v3214_v49, %v3181_v44  ;;  %v3242_v47 = vadd.f32 1e-05, %v773_v45  ;;  %vm921_vm14 = vweird.f32 %v3214_v49 }
 0x1c3   : > { %4057 = vst [vmem:[#allocation22_spill] sm:$0xff] %v3220_v4  ;;  %v634_v41 = vmul.f32 %v3217_v3, %v3217_v3  ;;  %v635_v20 = vmul.f32 %v3220_v4, %v3220_v4  ;;  %2230 = vrsqrt.f32 %v3226_v36  ;;  %v928_v2 = vsub.f32 1.5, %v927_v55  ;;  %v3257_v55 = vld [vmem:[%s2651_s13 + $0x198] sm:$0xff]  ;;  %vm922_vm1 = vmor %vm920_vm0, %vm921_vm14 }
 0x1c4   : > { %v913_v8 = vsel %vm912_vm11, %v2225_v33, %v909_v56  ;;  %v916_v53 = vmul.f32 %v3214_v49, %v915_v40  ;;  %v1435_v42 = vpop.f32.mrf.mxu0  ;;  %2232 = vrsqrt.f32 %v3242_v47  ;;  %vm940_vm2 = vweird.f32 %v3226_v36 }
 0x1c5   : > { %v1160_v1 = vmul.f32 %v913_v8, %v2862_v29  ;;  %v1548_v39 = vpop.f32.mrf.mxu1  ;;  %v715_v13 = vadd.f32 %v635_v20, %v634_v41  ;;  %v1161_v14 = vmul.f32 %v913_v8, %v2865_v31  ;;  %v1436_v9 = vadd.f32 %v1435_v42, %v3212_v61  ;;  %v3254_v8 = vld [vmem:[%s2651_s13 + $0x190] sm:$0xff] }
 0x1c6   : > { %v917_v33 = vmul.f32 0.5, %v916_v53  ;;  %v702_v0 = vpop.xlane.xlu1 %701  ;;  %v460_v63 = vpop.xlane.xlu2 %459  ;;  %480 = vadd.xlane.f32.xlu1 %v479_v52  ;;  %vm960_vm8 = vweird.f32 %v3242_v47 }
 0x1c7   : > { %474 = vadd.xlane.f32.xlu0 %v473_v18  ;;  %v1230_v29 = vmul.f32 %v2908_v54, %v1160_v1  ;;  %v772_v56 = vmul.f32 %v702_v0, %v2699_v30  ;;  %716 = vadd.xlane.f32.xlu2 %v715_v13  ;;  %v1231_v31 = vmul.f32 %v2913_v11, %v1161_v14  ;;  %v466_v20 = vpop.xlane.xlu0 %465  ;;  %v3284_v0 = vld [vmem:[%s2651_s13 + $0x1b0] sm:$0xff] }
 0x1c8   : > { %v918_v45 = vsub.f32 1.5, %v917_v33  ;;  %v1549_v40 = vadd.f32 %v1548_v39, %v1436_v9  ;;  %v523_v41 = vmul.f32 %v2699_v30, %v460_v63  ;;  %v525_v1 = vmul.f32 %v2699_v30, %v466_v20 }
 0x1c9   : > { %v1300_v18 = vadd.f32 %v2923_v60, %v1230_v29  ;;  %v3260_v53 = vadd.f32 1e-05, %v772_v56  ;;  %v1301_v42 = vadd.f32 %v2928_v26, %v1231_v31  ;;  %v3264_v39 = vpop.eup %2230  ;;  %v476_v9 = vadd.f32 %v3257_v55, %v3254_v8  ;;  %v3287_v29 = vld [vmem:[%s2651_s13 + $0x1b8] sm:$0xff] }
 0x1ca   : > { %v919_v52 = vmul.f32 %v3214_v49, %v918_v45  ;;  %1870 = vst [vmem:[%s3269_s3] sm:$0xff] %v1549_v40  ;;  %v3273_v13 = vsub.f32 %v3006_v22, %v523_v41  ;;  %v3276_v14 = vsub.f32 %v3016_v48, %v523_v41  ;;  %v935_v33 = vmul.f32 %v3264_v39, %v3226_v36 }
 0x1cb   : > { %1458 = vmatmul.f32.gmra.mxu0 %v1300_v18  ;;  %1684 = vmatmul.f32.gmra.mxu2 %v1300_v18  ;;  %2234 = vrsqrt.f32 %v3260_v53  ;;  %v929_v22 = vmul.f32 %v3179_v59, %v928_v2  ;;  %v3300_v63 = vsub.f32 %v3019_v12, %v525_v1  ;;  %v3303_v56 = vsub.f32 %v3022_v19, %v525_v1  ;;  %v1661_v31 = vpop.f32.mrf.mxu2 }
 0x1cc   : > { %4058 = vst [vmem:[#allocation23_spill] sm:$0xff] %v3273_v13  ;;  %1571 = vmatmul.f32.gmra.mxu1 %v1301_v42  ;;  %1797 = vmatmul.f32.gmra.mxu3 %v1301_v42  ;;  %v1774_v45 = vpop.f32.mrf.mxu3  ;;  %v936_v2 = vmul.f32 %v3264_v39, %v935_v33  ;;  %v1662_v62 = vadd.f32 %v1661_v31, %v3238_v27  ;;  %v3322_v42 = vpop.eup %2232  ;;  %vm941_vm3 = vweird.f32 %v3264_v39  ;;  %vm950_vm5 = vweird.f32 %v3260_v53 }
 0x1cd   : > { %4059 = vst [vmem:[#allocation24_spill] sm:$0xff] %v3276_v14  ;;  %v638_v40 = vmul.f32 %v3273_v13, %v3273_v13  ;;  %v639_v12 = vmul.f32 %v3276_v14, %v3276_v14  ;;  %v1438_v44 = vpop.f32.mrf.mxu0  ;;  %v1551_v19 = vpop.f32.mrf.mxu1  ;;  %v642_v41 = vmul.f32 %v3300_v63, %v3300_v63  ;;  %v643_v20 = vmul.f32 %v3303_v56, %v3303_v56  ;;  %vm942_vm4 = vmor %vm940_vm2, %vm941_vm3 }
 0x1ce   : > { %4062 = vst [vmem:[#allocation25_spill] sm:$0xff] %v3300_v63  ;;  %v923_v18 = vsel %vm922_vm1, %v3214_v49, %v919_v52  ;;  %v3320_v1 = vadd.f32 %v3287_v29, %v3284_v0  ;;  %v937_v33 = vmul.f32 0.5, %v936_v2  ;;  %v1775_v31 = vadd.f32 %v1774_v45, %v1662_v62  ;;  %v708_v13 = vpop.xlane.xlu2 %707  ;;  %v463_v58 = vpop.xlane.xlu1 %462  ;;  %v3326_v63 = vld [vmem:[%s2651_s13 + $0x1d0] sm:$0xff] }
 0x1cf   : > { %4063 = vst [vmem:[#allocation26_spill] sm:$0xff] %v3303_v56  ;;  %v1439_v14 = vadd.f32 %v1438_v44, %v3212_v61  ;;  %v721_v21 = vadd.f32 %v639_v12, %v638_v40  ;;  %477 = vadd.xlane.f32.xlu2 %v476_v9  ;;  %v3329_v56 = vld [vmem:[%s2651_s13 + $0x1d8] sm:$0xff]  ;;  %v774_v49 = vmul.f32 %v708_v13, %v2699_v30  ;;  %vm961_vm9 = vweird.f32 %v3322_v42 }
 0x1d0   : > { %v524_v52 = vmul.f32 %v2699_v30, %v463_v58  ;;  %v727_v4 = vadd.f32 %v643_v20, %v642_v41  ;;  %v933_v45 = vsel %vm3294_vm15, %v3179_v59, %v929_v22  ;;  %1871 = vst [vmem:[%s3269_s3 + $0x8] sm:$0xff] %v1775_v31  ;;  %v1162_v9 = vmul.f32 %v923_v18, %v2897_v17  ;;  %vm962_vm10 = vmor %vm960_vm8, %vm961_vm9 }
 0x1d1   : > { %v3336_v2 = vpop.eup %2234  ;;  %v1552_v62 = vadd.f32 %v1551_v19, %v1439_v14  ;;  %722 = vadd.xlane.f32.xlu0 %v721_v21  ;;  %v1163_v40 = vmul.f32 %v923_v18, %v2900_v28  ;;  %v938_v12 = vsub.f32 1.5, %v937_v33  ;;  %v3343_v44 = vadd.f32 1e-05, %v774_v49 }
 0x1d2   : > { %v945_v13 = vmul.f32 %v3336_v2, %v3260_v53  ;;  %728 = vadd.xlane.f32.xlu1 %v727_v4  ;;  %v488_v58 = vadd.f32 %v3329_v56, %v3326_v63  ;;  %v3349_v59 = vsub.f32 %v3051_v34, %v524_v52  ;;  %v3352_v21 = vsub.f32 %v3054_v10, %v524_v52  ;;  %v4064_v4 = vld [vmem:[#allocation15_spill] sm:$0xff] }
 0x1d3   : > { %1872 = vst [vmem:[%s3269_s3 + $0x10] sm:$0xff] %v1552_v62  ;;  %v1232_v17 = vmul.f32 %v2908_v54, %v1162_v9  ;;  %v1164_v28 = vmul.f32 %v933_v45, %v2854_v6  ;;  %v955_v14 = vmul.f32 %v3322_v42, %v3242_v47  ;;  %2236 = vrsqrt.f32 %v3343_v44 }
 0x1d4   : > { %v946_v22 = vmul.f32 %v3336_v2, %v945_v13  ;;  %v1165_v48 = vmul.f32 %v933_v45, %v4064_v4  ;;  %v1664_v19 = vpop.f32.mrf.mxu2  ;;  %v1777_v41 = vpop.f32.mrf.mxu3  ;;  %v1233_v10 = vmul.f32 %v2913_v11, %v1163_v40  ;;  %v640_v20 = vmul.f32 %v3349_v59, %v3349_v59 }
 0x1d5   : > { %v1302_v34 = vadd.f32 %v2923_v60, %v1232_v17  ;;  %v641_v6 = vmul.f32 %v3352_v21, %v3352_v21  ;;  %v939_v18 = vmul.f32 %v3264_v39, %v938_v12  ;;  %v1665_v31 = vadd.f32 %v1664_v19, %v3238_v27  ;;  %v1441_v49 = vpop.f32.mrf.mxu0  ;;  %v1554_v52 = vpop.f32.mrf.mxu1 }
 0x1d6   : > { %v947_v33 = vmul.f32 0.5, %v946_v22  ;;  %v1303_v45 = vadd.f32 %v2928_v26, %v1233_v10  ;;  %v1442_v62 = vadd.f32 %v1441_v49, %v3212_v61  ;;  %v469_v9 = vpop.xlane.xlu2 %468  ;;  %v711_v40 = vpop.xlane.xlu1 %710  ;;  %v956_v12 = vmul.f32 %v3322_v42, %v955_v14 }
 0x1d7   : > { %1461 = vmatmul.f32.gmra.mxu0 %v1302_v34  ;;  %1687 = vmatmul.f32.gmra.mxu2 %v1302_v34  ;;  %v724_v13 = vadd.f32 %v641_v6, %v640_v20  ;;  %v1778_v17 = vadd.f32 %v1777_v41, %v1665_v31  ;;  %v526_v22 = vmul.f32 %v2699_v30, %v469_v9  ;;  %vm951_vm6 = vweird.f32 %v3336_v2  ;;  %v3403_v6 = vld [vmem:[%s2651_s13 + $0x1c0] sm:$0xff] }
 0x1d8   : > { %v775_v4 = vmul.f32 %v711_v40, %v2699_v30  ;;  %1574 = vmatmul.f32.gmra.mxu1 %v1303_v45  ;;  %1800 = vmatmul.f32.gmra.mxu3 %v1303_v45  ;;  %v1555_v19 = vadd.f32 %v1554_v52, %v1442_v62  ;;  %v1234_v10 = vmul.f32 %v2908_v54, %v1164_v28  ;;  %v948_v14 = vsub.f32 1.5, %v947_v33  ;;  %v3406_v33 = vld [vmem:[%s2651_s13 + $0x1c8] sm:$0xff]  ;;  %vm952_vm7 = vmor %vm950_vm5, %vm951_vm6 }
 0x1d9   : > { %v1235_v34 = vmul.f32 %v2913_v11, %v1165_v48  ;;  %v3378_v49 = vpop.eup %2236  ;;  %1873 = vst [vmem:[%s3269_s3 + $0x18] sm:$0xff] %v1778_v17  ;;  %v3386_v41 = vsub.f32 %v3098_v16, %v526_v22  ;;  %v3389_v20 = vsub.f32 %v3101_v32, %v526_v22  ;;  %483 = vadd.xlane.f32.xlu0 %v3320_v1  ;;  %v957_v48 = vmul.f32 0.5, %v956_v12 }
 0x1da   : > { %v3391_v28 = vadd.f32 1e-05, %v775_v4  ;;  %1874 = vst [vmem:[%s3269_s3 + $0x20] sm:$0xff] %v1555_v19  ;;  %725 = vadd.xlane.f32.xlu2 %v724_v13  ;;  %489 = vadd.xlane.f32.xlu1 %v488_v58  ;;  %v943_v36 = vsel %vm942_vm4, %v3264_v39, %v939_v18  ;;  %v965_v1 = vmul.f32 %v3378_v49, %v3343_v44  ;;  %vm970_vm11 = vweird.f32 %v3343_v44 }
 0x1db   : > { %v644_v16 = vmul.f32 %v3386_v41, %v3386_v41  ;;  %v645_v32 = vmul.f32 %v3389_v20, %v3389_v20  ;;  %v1304_v18 = vadd.f32 %v2923_v60, %v1234_v10  ;;  %v1166_v31 = vmul.f32 %v943_v36, %v2952_v35  ;;  %v4065_v35 = vld [vmem:[#allocation18_spill] sm:$0xff] }
 0x1dc   : > { %2238 = vrsqrt.f32 %v3391_v28  ;;  %v1667_v58 = vpop.f32.mrf.mxu2  ;;  %v1780_v39 = vpop.f32.mrf.mxu3  ;;  %v949_v52 = vmul.f32 %v3336_v2, %v948_v14  ;;  %v1305_v62 = vadd.f32 %v2928_v26, %v1235_v34  ;;  %v485_v22 = vadd.f32 %v3406_v33, %v3403_v6 }
 0x1dd   : > { %v1668_v45 = vadd.f32 %v1667_v58, %v3238_v27  ;;  %v1444_v9 = vpop.f32.mrf.mxu0  ;;  %v1557_v40 = vpop.f32.mrf.mxu1  ;;  %v730_v13 = vadd.f32 %v645_v32, %v644_v16  ;;  %v1167_v4 = vmul.f32 %v943_v36, %v4065_v35  ;;  %v958_v34 = vsub.f32 1.5, %v957_v48  ;;  %v3435_v48 = vld [vmem:[%s2651_s13 + $0x1e0] sm:$0xff] }
 0x1de   : > { %v1445_v12 = vadd.f32 %v1444_v9, %v3212_v61  ;;  %v472_v17 = vpop.xlane.xlu1 %471  ;;  %v966_v14 = vmul.f32 %v3378_v49, %v965_v1  ;;  %v1236_v32 = vmul.f32 %v2908_v54, %v1166_v31  ;;  %v953_v53 = vsel %vm952_vm7, %v3336_v2, %v949_v52  ;;  %v4066_v35 = vld [vmem:[#allocation19_spill] sm:$0xff] }
 0x1df   : > { %1464 = vmatmul.f32.gmra.mxu0 %v1304_v18  ;;  %1690 = vmatmul.f32.gmra.mxu2 %v1304_v18  ;;  %v1781_v19 = vadd.f32 %v1780_v39, %v1668_v45  ;;  %v527_v10 = vmul.f32 %v2699_v30, %v472_v17  ;;  %v3438_v39 = vld [vmem:[%s2651_s13 + $0x1e8] sm:$0xff]  ;;  %v1237_v18 = vmul.f32 %v2913_v11, %v1167_v4  ;;  %vm971_vm12 = vweird.f32 %v3378_v49 }
 0x1e0   : > { %1577 = vmatmul.f32.gmra.mxu1 %v1305_v62  ;;  %1803 = vmatmul.f32.gmra.mxu3 %v1305_v62  ;;  %v1558_v16 = vadd.f32 %v1557_v40, %v1445_v12  ;;  %v959_v31 = vmul.f32 %v3322_v42, %v958_v34  ;;  %v1306_v52 = vadd.f32 %v2923_v60, %v1236_v32  ;;  %v967_v40 = vmul.f32 0.5, %v966_v14  ;;  %vm972_vm13 = vmor %vm970_vm11, %vm971_vm12 }
 0x1e1   : > { %1875 = vst [vmem:[%s3269_s3 + $0x28] sm:$0xff] %v1781_v19  ;;  %v3429_v36 = vsub.f32 %v3122_v7, %v527_v10  ;;  %v3432_v58 = vsub.f32 %v3125_v46, %v527_v10  ;;  %731 = vadd.xlane.f32.xlu0 %v730_v13  ;;  %v491_v62 = vadd.f32 %v3438_v39, %v3435_v48  ;;  %vm980_vm14 = vweird.f32 %v3391_v28 }
 0x1e2   : > { %v3441_v1 = vpop.eup %2238  ;;  %1876 = vst [vmem:[%s3269_s3 + $0x30] sm:$0xff] %v1558_v16  ;;  %486 = vadd.xlane.f32.xlu2 %v485_v22  ;;  %v1168_v9 = vmul.f32 %v953_v53, %v3000_v5  ;;  %v1169_v4 = vmul.f32 %v953_v53, %v4066_v35  ;;  %v1307_v5 = vadd.f32 %v2928_v26, %v1237_v18  ;;  %v968_v32 = vsub.f32 1.5, %v967_v40  ;;  %v4068_v35 = vld [vmem:[#allocation17_spill] sm:$0xff] }
 0x1e3   : > { %v646_v7 = vmul.f32 %v3429_v36, %v3429_v36  ;;  %v647_v46 = vmul.f32 %v3432_v58, %v3432_v58  ;;  %v975_v13 = vmul.f32 %v3441_v1, %v3391_v28  ;;  %v963_v53 = vsel %vm962_vm10, %v3322_v42, %v959_v31 }
 0x1e4   : > { %v1670_v45 = vpop.f32.mrf.mxu2  ;;  %v1783_v2 = vpop.f32.mrf.mxu3  ;;  %v1238_v16 = vmul.f32 %v2908_v54, %v1168_v9  ;;  %v1239_v18 = vmul.f32 %v2913_v11, %v1169_v4  ;;  %v4067_v9 = vld [vmem:[#allocation16_spill] sm:$0xff]  ;;  %v969_v42 = vmul.f32 %v3378_v49, %v968_v32  ;;  %v1171_v4 = vmul.f32 %v963_v53, %v4068_v35 }
 0x1e5   : > { %v1671_v12 = vadd.f32 %v1670_v45, %v3238_v27  ;;  %v1447_v17 = vpop.f32.mrf.mxu0  ;;  %v1560_v22 = vpop.f32.mrf.mxu1  ;;  %v733_v10 = vadd.f32 %v647_v46, %v646_v7  ;;  %v976_v47 = vmul.f32 %v3441_v1, %v975_v13  ;;  %v3473_v45 = vld [vmem:[%s2651_s13 + $0x1f0] sm:$0xff]  ;;  %v3476_v7 = vld [vmem:[%s2651_s13 + $0x1f8] sm:$0xff]  ;;  %vm981_vm15 = vweird.f32 %v3441_v1 }
 0x1e6   : > { %v1448_v19 = vadd.f32 %v1447_v17, %v3212_v61  ;;  %v494_v44 = vadd.f32 %v3476_v7, %v3473_v45  ;;  %v1309_v17 = vadd.f32 %v2928_v26, %v1239_v18  ;;  %vm982_vm0 = vmor %vm980_vm14, %vm981_vm15 }
 0x1e7   : > { %1467 = vmatmul.f32.gmra.mxu0 %v1306_v52  ;;  %1693 = vmatmul.f32.gmra.mxu2 %v1306_v52  ;;  %v1784_v34 = vadd.f32 %v1783_v2, %v1671_v12  ;;  %v1308_v52 = vadd.f32 %v2923_v60, %v1238_v16  ;;  %v977_v31 = vmul.f32 0.5, %v976_v47  ;;  %v1241_v16 = vmul.f32 %v2913_v11, %v1171_v4 }
 0x1e8   : > { %1580 = vmatmul.f32.gmra.mxu1 %v1307_v5  ;;  %1806 = vmatmul.f32.gmra.mxu3 %v1307_v5  ;;  %v1561_v14 = vadd.f32 %v1560_v22, %v1448_v19 }
 0x1e9   : > { %1877 = vst [vmem:[%s3269_s3 + $0x38] sm:$0xff] %v1784_v34  ;;  %492 = vadd.xlane.f32.xlu0 %v491_v62  ;;  %v1170_v62 = vmul.f32 %v963_v53, %v4067_v9  ;;  %v978_v34 = vsub.f32 1.5, %v977_v31  ;;  %v1311_v28 = vadd.f32 %v2928_v26, %v1241_v16 }
 0x1ea   : > { %1878 = vst [vmem:[%s3269_s3 + $0x40] sm:$0xff] %v1561_v14  ;;  %734 = vadd.xlane.f32.xlu2 %v733_v10  ;;  %v973_v14 = vsel %vm972_vm13, %v3378_v49, %v969_v42 }
 0x1eb   : > { %v1240_v10 = vmul.f32 %v2908_v54, %v1170_v62  ;;  %v1172_v18 = vmul.f32 %v973_v14, %v3060_v38  ;;  %v1173_v62 = vmul.f32 %v973_v14, %v3063_v15 }
 0x1ec   : > { %v1673_v46 = vpop.f32.mrf.mxu2  ;;  %v1786_v2 = vpop.f32.mrf.mxu3 }
 0x1ed   : > { %v1674_v40 = vadd.f32 %v1673_v46, %v3238_v27  ;;  %v1450_v13 = vpop.f32.mrf.mxu0  ;;  %v1563_v12 = vpop.f32.mrf.mxu1  ;;  %v1310_v53 = vadd.f32 %v2923_v60, %v1240_v10  ;;  %v979_v46 = vmul.f32 %v3441_v1, %v978_v34  ;;  %v1242_v31 = vmul.f32 %v2908_v54, %v1172_v18 }
 0x1ee   : > { %v1451_v22 = vadd.f32 %v1450_v13, %v3212_v61  ;;  %v1243_v13 = vmul.f32 %v2913_v11, %v1173_v62 }
 0x1ef   : > { %1470 = vmatmul.f32.gmra.mxu0 %v1308_v52  ;;  %1696 = vmatmul.f32.gmra.mxu2 %v1308_v52  ;;  %v1787_v5 = vadd.f32 %v1786_v2, %v1674_v40  ;;  %v983_v40 = vsel %vm982_vm0, %v3441_v1, %v979_v46 }
 0x1f0   : > { %1583 = vmatmul.f32.gmra.mxu1 %v1309_v17  ;;  %1809 = vmatmul.f32.gmra.mxu3 %v1309_v17  ;;  %v1564_v19 = vadd.f32 %v1563_v12, %v1451_v22  ;;  %v1312_v17 = vadd.f32 %v2923_v60, %v1242_v31  ;;  %v1174_v15 = vmul.f32 %v983_v40, %v3088_v57 }
 0x1f1   : > { %1879 = vst [vmem:[%s3269_s3 + $0x48] sm:$0xff] %v1787_v5  ;;  %v1313_v4 = vadd.f32 %v2928_v26, %v1243_v13  ;;  %v1175_v5 = vmul.f32 %v983_v40, %v3091_v25 }
 0x1f2   : > { %1880 = vst [vmem:[%s3269_s3 + $0x50] sm:$0xff] %v1564_v19  ;;  %495 = vadd.xlane.f32.xlu2 %v494_v44  ;;  %v1244_v14 = vmul.f32 %v2908_v54, %v1174_v15 }
 0x1f3   : > { %v1245_v57 = vmul.f32 %v2913_v11, %v1175_v5 }
 0x1f4   : > { %v1676_v32 = vpop.f32.mrf.mxu2  ;;  %v1789_v47 = vpop.f32.mrf.mxu3 }
 0x1f5   : > { %v1677_v2 = vadd.f32 %v1676_v32, %v3238_v27  ;;  %v1453_v49 = vpop.f32.mrf.mxu0  ;;  %v1566_v52 = vpop.f32.mrf.mxu1  ;;  %v1314_v32 = vadd.f32 %v2923_v60, %v1244_v14  ;;  %v1315_v25 = vadd.f32 %v2928_v26, %v1245_v57 }
 0x1f6   : > { %v1454_v9 = vadd.f32 %v1453_v49, %v3212_v61 }
 0x1f7   : > { %1473 = vmatmul.f32.gmra.mxu0 %v1310_v53  ;;  %1699 = vmatmul.f32.gmra.mxu2 %v1310_v53  ;;  %v1790_v42 = vadd.f32 %v1789_v47, %v1677_v2 }
 0x1f8   : > { %1586 = vmatmul.f32.gmra.mxu1 %v1311_v28  ;;  %1812 = vmatmul.f32.gmra.mxu3 %v1311_v28  ;;  %v1567_v38 = vadd.f32 %v1566_v52, %v1454_v9 }
 0x1f9   : > { %1881 = vst [vmem:[%s3269_s3 + $0x58] sm:$0xff] %v1790_v42 }
 0x1fa   : > { %1882 = vst [vmem:[%s3269_s3 + $0x60] sm:$0xff] %v1567_v38 }
 0x1fc   : > { %v1679_v12 = vpop.f32.mrf.mxu2  ;;  %v1792_v44 = vpop.f32.mrf.mxu3 }
 0x1fd   : > { %v1680_v22 = vadd.f32 %v1679_v12, %v3238_v27  ;;  %v1456_v35 = vpop.f32.mrf.mxu0  ;;  %v1569_v10 = vpop.f32.mrf.mxu1 }
 0x1fe   : > { %v1457_v1 = vadd.f32 %v1456_v35, %v3212_v61 }
 0x1ff   : > { %1476 = vmatmul.f32.gmra.mxu0 %v1312_v17  ;;  %1702 = vmatmul.f32.gmra.mxu2 %v1312_v17  ;;  %v1793_v19 = vadd.f32 %v1792_v44, %v1680_v22 }
 0x200   : > { %1589 = vmatmul.f32.gmra.mxu1 %v1313_v4  ;;  %1815 = vmatmul.f32.gmra.mxu3 %v1313_v4  ;;  %v1570_v34 = vadd.f32 %v1569_v10, %v1457_v1 }
 0x201   : > { %1883 = vst [vmem:[%s3269_s3 + $0x68] sm:$0xff] %v1793_v19 }
 0x202   : > { %1884 = vst [vmem:[%s3269_s3 + $0x70] sm:$0xff] %v1570_v34 }
 0x204   : > { %v1682_v16 = vpop.f32.mrf.mxu2  ;;  %v1795_v53 = vpop.f32.mrf.mxu3 }
 0x205   : > { %v1683_v47 = vadd.f32 %v1682_v16, %v3238_v27 }
 0x207   : > { %1479 = vmatmul.f32.gmra.mxu0 %v1314_v32  ;;  %1705 = vmatmul.f32.gmra.mxu2 %v1314_v32  ;;  %v1796_v18 = vadd.f32 %v1795_v53, %v1683_v47 }
 0x208   : > { %1592 = vmatmul.f32.gmra.mxu1 %v1315_v25  ;;  %1818 = vmatmul.f32.gmra.mxu3 %v1315_v25 }
 0x209   : > { %1885 = vst [vmem:[%s3269_s3 + $0x78] sm:$0xff] %v1796_v18 }
 0x231   : > { %v720_v49 = vpop.xlane.xlu1 %719 }
 0x232   : > { %v714_v46 = vpop.xlane.xlu0 %713  ;;  %v778_v52 = vmul.f32 %v720_v49, %v2699_v30 }
 0x233   : > { %v776_v2 = vmul.f32 %v714_v46, %v2699_v30 }
 0x234   : > { %v3524_v9 = vadd.f32 1e-05, %v778_v52 }
 0x235   : > { %v808_v28 = vadd.f32 1e-05, %v776_v2 }
 0x236   : > { %vm1010_vm4 = vweird.f32 %v3524_v9 }
 0x237   : > { %2240 = vrsqrt.f32 %v808_v28  ;;  %vm990_vm2 = vweird.f32 %v808_v28 }
 0x238   : > { %2242 = vrsqrt.f32 %v3524_v9 }
 0x239   : > { %v481_v40 = vpop.xlane.xlu1 %480 }
 0x23a   : > { %v475_v62 = vpop.xlane.xlu0 %474  ;;  %v717_v42 = vpop.xlane.xlu2 %716  ;;  %v530_v12 = vmul.f32 %v2699_v30, %v481_v40 }
 0x23b   : > { %v528_v38 = vmul.f32 %v2699_v30, %v475_v62  ;;  %v777_v31 = vmul.f32 %v717_v42, %v2699_v30 }
 0x23c   : > { %v3541_v4 = vsub.f32 %v3206_v50, %v530_v12  ;;  %v3544_v1 = vsub.f32 %v3209_v51, %v530_v12 }
 0x23d   : > { %v2241_v13 = vpop.eup %2240  ;;  %v3531_v44 = vsub.f32 %v3198_v43, %v528_v38  ;;  %v3534_v17 = vsub.f32 %v3203_v24, %v528_v38  ;;  %v3536_v22 = vadd.f32 1e-05, %v777_v31 }
 0x23e   : > { %v985_v15 = vmul.f32 %v2241_v13, %v808_v28  ;;  %v3538_v35 = vpop.eup %2242  ;;  %v652_v50 = vmul.f32 %v3541_v4, %v3541_v4  ;;  %v653_v51 = vmul.f32 %v3544_v1, %v3544_v1  ;;  %vm991_vm1 = vweird.f32 %v2241_v13 }
 0x23f   : > { %v648_v5 = vmul.f32 %v3531_v44, %v3531_v44  ;;  %v649_v43 = vmul.f32 %v3534_v17, %v3534_v17  ;;  %v1005_v24 = vmul.f32 %v3538_v35, %v3524_v9  ;;  %2244 = vrsqrt.f32 %v3536_v22  ;;  %vm992_vm3 = vmor %vm990_vm2, %vm991_vm1 }
 0x240   : > { %v986_v19 = vmul.f32 %v2241_v13, %v985_v15  ;;  %v742_v49 = vadd.f32 %v653_v51, %v652_v50  ;;  %vm1011_vm5 = vweird.f32 %v3538_v35  ;;  %vm1000_vm8 = vweird.f32 %v3536_v22 }
 0x241   : > { %v736_v10 = vadd.f32 %v649_v43, %v648_v5  ;;  %v1006_v14 = vmul.f32 %v3538_v35, %v1005_v24  ;;  %vm3602_vm6 = vmor %vm1010_vm4, %vm1011_vm5 }
 0x242   : > { %v987_v34 = vmul.f32 0.5, %v986_v19  ;;  %v478_v57 = vpop.xlane.xlu2 %477 }
 0x243   : > { %737 = vadd.xlane.f32.xlu1 %v736_v10  ;;  %v529_v32 = vmul.f32 %v2699_v30, %v478_v57  ;;  %v1007_v52 = vmul.f32 0.5, %v1006_v14 }
 0x244   : > { %v988_v16 = vsub.f32 1.5, %v987_v34  ;;  %v723_v47 = vpop.xlane.xlu0 %722 }
 0x245   : > { %v3559_v53 = vpop.eup %2244  ;;  %v3562_v18 = vsub.f32 %v3254_v8, %v529_v32  ;;  %v3565_v46 = vsub.f32 %v3257_v55, %v529_v32  ;;  %v729_v2 = vpop.xlane.xlu1 %728  ;;  %v779_v28 = vmul.f32 %v723_v47, %v2699_v30  ;;  %v1008_v10 = vsub.f32 1.5, %v1007_v52 }
 0x246   : > { %v989_v25 = vmul.f32 %v2241_v13, %v988_v16  ;;  %v995_v62 = vmul.f32 %v3559_v53, %v3536_v22  ;;  %v781_v42 = vmul.f32 %v729_v2, %v2699_v30  ;;  %vm1001_vm7 = vweird.f32 %v3559_v53 }
 0x247   : > { %v650_v31 = vmul.f32 %v3562_v18, %v3562_v18  ;;  %v651_v8 = vmul.f32 %v3565_v46, %v3565_v46  ;;  %v3578_v15 = vadd.f32 1e-05, %v779_v28  ;;  %v1009_v47 = vmul.f32 %v3538_v35, %v1008_v10  ;;  %vm1002_vm9 = vmor %vm1000_vm8, %vm1001_vm7 }
 0x248   : > { %v1459_v38 = vpop.f32.mrf.mxu0  ;;  %v993_v55 = vsel %vm992_vm3, %v2241_v13, %v989_v25  ;;  %v996_v40 = vmul.f32 %v3559_v53, %v995_v62  ;;  %v3576_v12 = vadd.f32 1e-05, %v781_v42 }
 0x249   : > { %v1460_v5 = vadd.f32 %v1459_v38, %v3212_v61  ;;  %v739_v43 = vadd.f32 %v651_v8, %v650_v31  ;;  %v1176_v24 = vmul.f32 %v993_v55, %v3168_v23  ;;  %v1177_v19 = vmul.f32 %v993_v55, %v3171_v37  ;;  %v1572_v50 = vpop.f32.mrf.mxu1 }
 0x24a   : > { %v997_v34 = vmul.f32 0.5, %v996_v40  ;;  %2246 = vrsqrt.f32 %v3578_v15  ;;  %vm1020_vm10 = vweird.f32 %v3578_v15  ;;  %v1013_v22 = vsel %vm3602_vm6, %v3538_v35, %v1009_v47  ;;  %v4071_v35 = vld [vmem:[#allocation22_spill] sm:$0xff] }
 0x24b   : > { %743 = vadd.xlane.f32.xlu1 %v742_v49  ;;  %v1573_v13 = vadd.f32 %v1572_v50, %v1460_v5  ;;  %740 = vadd.xlane.f32.xlu0 %v739_v43  ;;  %v1246_v51 = vmul.f32 %v2908_v54, %v1176_v24  ;;  %v1247_v14 = vmul.f32 %v2913_v11, %v1177_v19  ;;  %2248 = vrsqrt.f32 %v3576_v12 }
 0x24c   : > { %v998_v57 = vsub.f32 1.5, %v997_v34  ;;  %v484_v23 = vpop.xlane.xlu0 %483  ;;  %vm1040_vm0 = vweird.f32 %v3576_v12 }
 0x24d   : > { %1886 = vst [vmem:[%s3269_s3 + $0x80] sm:$0xff] %v1573_v13  ;;  %v1316_v16 = vadd.f32 %v2923_v60, %v1246_v51  ;;  %v1317_v32 = vadd.f32 %v2928_v26, %v1247_v14  ;;  %v726_v25 = vpop.xlane.xlu2 %725  ;;  %v490_v2 = vpop.xlane.xlu1 %489  ;;  %v531_v49 = vmul.f32 %v2699_v30, %v484_v23 }
 0x24e   : > { %v1685_v37 = vpop.f32.mrf.mxu2  ;;  %v999_v62 = vmul.f32 %v3559_v53, %v998_v57  ;;  %v780_v42 = vmul.f32 %v726_v25, %v2699_v30  ;;  %v533_v28 = vmul.f32 %v2699_v30, %v490_v2 }
 0x24f   : > { %v1686_v52 = vadd.f32 %v1685_v37, %v3238_v27  ;;  %v1798_v38 = vpop.f32.mrf.mxu3  ;;  %1482 = vmatmul.f32.gmra.mxu0 %v1316_v16  ;;  %1595 = vmatmul.f32.gmra.mxu1 %v1317_v32  ;;  %v3608_v8 = vsub.f32 %v3284_v0, %v531_v49  ;;  %v3611_v55 = vsub.f32 %v3287_v29, %v531_v49 }
 0x250   : > { %1708 = vmatmul.f32.gmra.mxu2 %v1316_v16  ;;  %1821 = vmatmul.f32.gmra.mxu3 %v1317_v32  ;;  %v3613_v5 = vpop.eup %2246  ;;  %v3615_v43 = vadd.f32 1e-05, %v780_v42  ;;  %v3618_v9 = vsub.f32 %v3326_v63, %v533_v28  ;;  %v3626_v29 = vsub.f32 %v3329_v56, %v533_v28  ;;  %v1003_v13 = vsel %vm1002_vm9, %v3559_v53, %v999_v62  ;;  %v4072_v42 = vld [vmem:[#allocation20_spill] sm:$0xff] }
 0x251   : > { %v1799_v40 = vadd.f32 %v1798_v38, %v1686_v52  ;;  %v3620_v24 = vpop.eup %2248  ;;  %v1015_v0 = vmul.f32 %v3613_v5, %v3578_v15  ;;  %v654_v19 = vmul.f32 %v3608_v8, %v3608_v8  ;;  %v655_v50 = vmul.f32 %v3611_v55, %v3611_v55 }
 0x252   : > { %2250 = vrsqrt.f32 %v3615_v43  ;;  %v658_v63 = vmul.f32 %v3618_v9, %v3618_v9  ;;  %v659_v34 = vmul.f32 %v3626_v29, %v3626_v29  ;;  %v1035_v51 = vmul.f32 %v3620_v24, %v3576_v12 }
 0x253   : > { %1887 = vst [vmem:[%s3269_s3 + $0x88] sm:$0xff] %v1799_v40  ;;  %v1016_v56 = vmul.f32 %v3613_v5, %v1015_v0  ;;  %v1178_v23 = vmul.f32 %v1003_v13, %v3217_v3  ;;  %v1179_v37 = vmul.f32 %v1003_v13, %v4071_v35  ;;  %v745_v49 = vadd.f32 %v655_v50, %v654_v19  ;;  %v4073_v40 = vld [vmem:[#allocation21_spill] sm:$0xff] }
 0x254   : > { %v1462_v10 = vpop.f32.mrf.mxu0  ;;  %v732_v57 = vpop.xlane.xlu0 %731  ;;  %v751_v2 = vadd.f32 %v659_v34, %v658_v63  ;;  %v1180_v28 = vmul.f32 %v1013_v22, %v4072_v42  ;;  %v1181_v0 = vmul.f32 %v1013_v22, %v4073_v40  ;;  %vm1021_vm11 = vweird.f32 %v3613_v5 }
 0x255   : > { %v1463_v14 = vadd.f32 %v1462_v10, %v3212_v61  ;;  %v1017_v16 = vmul.f32 0.5, %v1016_v56  ;;  %v1575_v32 = vpop.f32.mrf.mxu1  ;;  %v487_v47 = vpop.xlane.xlu2 %486  ;;  %v782_v25 = vmul.f32 %v732_v57, %v2699_v30  ;;  %v1248_v62 = vmul.f32 %v2908_v54, %v1178_v23  ;;  %746 = vadd.xlane.f32.xlu2 %v745_v49  ;;  %vm1022_vm12 = vmor %vm1020_vm10, %vm1021_vm11 }
 0x256   : > { %v532_v53 = vmul.f32 %v2699_v30, %v487_v47  ;;  %752 = vadd.xlane.f32.xlu1 %v751_v2  ;;  %v1249_v3 = vmul.f32 %v2913_v11, %v1179_v37  ;;  %v1036_v34 = vmul.f32 %v3620_v24, %v1035_v51  ;;  %v1250_v37 = vmul.f32 %v2908_v54, %v1180_v28 }
 0x257   : > { %v1576_v52 = vadd.f32 %v1575_v32, %v1463_v14  ;;  %v1018_v38 = vsub.f32 1.5, %v1017_v16  ;;  %v3655_v31 = vadd.f32 1e-05, %v782_v25  ;;  %v1318_v10 = vadd.f32 %v2923_v60, %v1248_v62 }
 0x258   : > { %v3659_v56 = vpop.eup %2250  ;;  %v3664_v19 = vsub.f32 %v3403_v6, %v532_v53  ;;  %v3667_v63 = vsub.f32 %v3406_v33, %v532_v53  ;;  %v1319_v6 = vadd.f32 %v2928_v26, %v1249_v3  ;;  %v1251_v62 = vmul.f32 %v2913_v11, %v1181_v0 }
 0x259   : > { %1888 = vst [vmem:[%s3269_s3 + $0x90] sm:$0xff] %v1576_v52  ;;  %v1019_v50 = vmul.f32 %v3613_v5, %v1018_v38  ;;  %v1025_v22 = vmul.f32 %v3659_v56, %v3615_v43  ;;  %2252 = vrsqrt.f32 %v3655_v31  ;;  %1485 = vmatmul.f32.gmra.mxu0 %v1318_v10  ;;  %1711 = vmatmul.f32.gmra.mxu2 %v1318_v10  ;;  %v1037_v42 = vmul.f32 0.5, %v1036_v34 }
 0x25a   : > { %v1688_v13 = vpop.f32.mrf.mxu2  ;;  %v656_v33 = vmul.f32 %v3664_v19, %v3664_v19  ;;  %v657_v35 = vmul.f32 %v3667_v63, %v3667_v63  ;;  %1598 = vmatmul.f32.gmra.mxu1 %v1319_v6  ;;  %1824 = vmatmul.f32.gmra.mxu3 %v1319_v6  ;;  %vm1030_vm13 = vweird.f32 %v3615_v43  ;;  %vm1031_vm14 = vweird.f32 %v3659_v56 }
 0x25b   : > { %v1689_v14 = vadd.f32 %v1688_v13, %v3238_v27  ;;  %v1026_v51 = vmul.f32 %v3659_v56, %v1025_v22  ;;  %v1801_v57 = vpop.f32.mrf.mxu3  ;;  %v1023_v25 = vsel %vm1022_vm12, %v3613_v5, %v1019_v50  ;;  %v4074_v50 = vld [vmem:[#allocation23_spill] sm:$0xff]  ;;  %v1320_v34 = vadd.f32 %v2923_v60, %v1250_v37  ;;  %v4075_v13 = vld [vmem:[#allocation24_spill] sm:$0xff]  ;;  %vm1032_vm15 = vmor %vm1030_vm13, %vm1031_vm14 }
 0x25c   : > { %v1465_v23 = vpop.f32.mrf.mxu0  ;;  %v493_v47 = vpop.xlane.xlu0 %492  ;;  %v748_v53 = vadd.f32 %v657_v35, %v656_v33  ;;  %v1182_v22 = vmul.f32 %v1023_v25, %v4074_v50  ;;  %vm1041_vm1 = vweird.f32 %v3620_v24  ;;  %vm1050_vm3 = vweird.f32 %v3655_v31 }
 0x25d   : > { %v1802_v16 = vadd.f32 %v1801_v57, %v1689_v14  ;;  %v1466_v32 = vadd.f32 %v1465_v23, %v3212_v61  ;;  %v1027_v15 = vmul.f32 0.5, %v1026_v51  ;;  %v1578_v2 = vpop.f32.mrf.mxu1  ;;  %v735_v49 = vpop.xlane.xlu2 %734  ;;  %v534_v52 = vmul.f32 %v2699_v30, %v493_v47  ;;  %vm3748_vm2 = vmor %vm1040_vm0, %vm1041_vm1 }
 0x25e   : > { %v783_v38 = vmul.f32 %v735_v49, %v2699_v30  ;;  %749 = vadd.xlane.f32.xlu0 %v748_v53  ;;  %v1183_v14 = vmul.f32 %v1023_v25, %v4075_v13  ;;  %v1321_v23 = vadd.f32 %v2928_v26, %v1251_v62  ;;  %v1038_v47 = vsub.f32 1.5, %v1037_v42 }
 0x25f   : > { %1889 = vst [vmem:[%s3269_s3 + $0x98] sm:$0xff] %v1802_v16  ;;  %v1579_v28 = vadd.f32 %v1578_v2, %v1466_v32  ;;  %v3694_v3 = vpop.eup %2252  ;;  %v1028_v40 = vsub.f32 1.5, %v1027_v15  ;;  %v3697_v5 = vsub.f32 %v3435_v48, %v534_v52  ;;  %v3700_v10 = vsub.f32 %v3438_v39, %v534_v52 }
 0x260   : > { %v3705_v0 = vadd.f32 1e-05, %v783_v38  ;;  %v1045_v48 = vmul.f32 %v3694_v3, %v3655_v31  ;;  %v1252_v32 = vmul.f32 %v2908_v54, %v1182_v22  ;;  %v1253_v53 = vmul.f32 %v2913_v11, %v1183_v14  ;;  %v4079_v31 = vld [vmem:[#allocation26_spill] sm:$0xff] }
 0x261   : > { %1890 = vst [vmem:[%s3269_s3 + $0xa0] sm:$0xff] %v1579_v28  ;;  %v1029_v6 = vmul.f32 %v3659_v56, %v1028_v40  ;;  %v660_v39 = vmul.f32 %v3697_v5, %v3697_v5  ;;  %v661_v51 = vmul.f32 %v3700_v10, %v3700_v10  ;;  %1488 = vmatmul.f32.gmra.mxu0 %v1320_v34  ;;  %vm1051_vm4 = vweird.f32 %v3694_v3 }
 0x262   : > { %v1691_v33 = vpop.f32.mrf.mxu2  ;;  %2254 = vrsqrt.f32 %v3705_v0  ;;  %1714 = vmatmul.f32.gmra.mxu2 %v1320_v34  ;;  %1601 = vmatmul.f32.gmra.mxu1 %v1321_v23  ;;  %v1046_v49 = vmul.f32 %v3694_v3, %v1045_v48  ;;  %v1322_v22 = vadd.f32 %v2923_v60, %v1252_v32  ;;  %vm1052_vm5 = vmor %vm1050_vm3, %vm1051_vm4  ;;  %vm1060_vm6 = vweird.f32 %v3705_v0 }
 0x263   : > { %v1692_v57 = vadd.f32 %v1691_v33, %v3238_v27  ;;  %v1804_v35 = vpop.f32.mrf.mxu3  ;;  %v754_v16 = vadd.f32 %v661_v51, %v660_v39  ;;  %1827 = vmatmul.f32.gmra.mxu3 %v1321_v23  ;;  %v1033_v2 = vsel %vm1032_vm15, %v3659_v56, %v1029_v6  ;;  %v1039_v56 = vmul.f32 %v3620_v24, %v1038_v47 }
 0x264   : > { %v1468_v37 = vpop.f32.mrf.mxu0  ;;  %v1184_v42 = vmul.f32 %v1033_v2, %v3349_v59  ;;  %v1047_v34 = vmul.f32 0.5, %v1046_v49  ;;  %v1323_v59 = vadd.f32 %v2928_v26, %v1253_v53  ;;  %v1185_v14 = vmul.f32 %v1033_v2, %v3352_v21  ;;  %v4078_v2 = vld [vmem:[#allocation25_spill] sm:$0xff] }
 0x265   : > { %v1805_v25 = vadd.f32 %v1804_v35, %v1692_v57  ;;  %v1469_v15 = vadd.f32 %v1468_v37, %v3212_v61  ;;  %v1581_v52 = vpop.f32.mrf.mxu1  ;;  %v496_v43 = vpop.xlane.xlu2 %495  ;;  %755 = vadd.xlane.f32.xlu2 %v754_v16  ;;  %v1043_v32 = vsel %vm3748_vm2, %v3620_v24, %v1039_v56 }
 0x266   : > { %v535_v28 = vmul.f32 %v2699_v30, %v496_v43  ;;  %v1254_v51 = vmul.f32 %v2908_v54, %v1184_v42  ;;  %v1048_v35 = vsub.f32 1.5, %v1047_v34  ;;  %v1186_v49 = vmul.f32 %v1043_v32, %v4078_v2 }
 0x267   : > { %1891 = vst [vmem:[%s3269_s3 + $0xa8] sm:$0xff] %v1805_v25  ;;  %v1582_v62 = vadd.f32 %v1581_v52, %v1469_v15  ;;  %v1255_v25 = vmul.f32 %v2913_v11, %v1185_v14 }
 0x268   : > { %v3733_v38 = vpop.eup %2254  ;;  %v3738_v40 = vsub.f32 %v3473_v45, %v535_v28  ;;  %v3741_v50 = vsub.f32 %v3476_v7, %v535_v28  ;;  %v1324_v15 = vadd.f32 %v2923_v60, %v1254_v51  ;;  %v1049_v52 = vmul.f32 %v3694_v3, %v1048_v35 }
 0x269   : > { %1892 = vst [vmem:[%s3269_s3 + $0xb0] sm:$0xff] %v1582_v62  ;;  %v1055_v12 = vmul.f32 %v3733_v38, %v3705_v0  ;;  %1491 = vmatmul.f32.gmra.mxu0 %v1322_v22  ;;  %v1325_v62 = vadd.f32 %v2928_v26, %v1255_v25  ;;  %v1187_v28 = vmul.f32 %v1043_v32, %v4079_v31  ;;  %vm1061_vm7 = vweird.f32 %v3733_v38 }
 0x26a   : > { %v1694_v13 = vpop.f32.mrf.mxu2  ;;  %1717 = vmatmul.f32.gmra.mxu2 %v1322_v22  ;;  %v662_v7 = vmul.f32 %v3738_v40, %v3738_v40  ;;  %v663_v48 = vmul.f32 %v3741_v50, %v3741_v50  ;;  %1604 = vmatmul.f32.gmra.mxu1 %v1323_v59  ;;  %v1053_v14 = vsel %vm1052_vm5, %v3694_v3, %v1049_v52  ;;  %vm1062_vm8 = vmor %vm1060_vm6, %vm1061_vm7 }
 0x26b   : > { %v1695_v45 = vadd.f32 %v1694_v13, %v3238_v27  ;;  %v1807_v33 = vpop.f32.mrf.mxu3  ;;  %1830 = vmatmul.f32.gmra.mxu3 %v1323_v59  ;;  %v1056_v37 = vmul.f32 %v3733_v38, %v1055_v12  ;;  %v1256_v12 = vmul.f32 %v2908_v54, %v1186_v49  ;;  %v1189_v0 = vmul.f32 %v1053_v14, %v3389_v20 }
 0x26c   : > { %v1471_v39 = vpop.f32.mrf.mxu0  ;;  %v757_v23 = vadd.f32 %v663_v48, %v662_v7  ;;  %v1188_v48 = vmul.f32 %v1053_v14, %v3386_v41 }
 0x26d   : > { %v1808_v21 = vadd.f32 %v1807_v33, %v1695_v45  ;;  %v1472_v57 = vadd.f32 %v1471_v39, %v3212_v61  ;;  %v1584_v16 = vpop.f32.mrf.mxu1  ;;  %v1057_v43 = vmul.f32 0.5, %v1056_v37  ;;  %v1257_v45 = vmul.f32 %v2913_v11, %v1187_v28 }
 0x26e   : > { %758 = vadd.xlane.f32.xlu0 %v757_v23  ;;  %v1326_v7 = vadd.f32 %v2923_v60, %v1256_v12  ;;  %v1258_v35 = vmul.f32 %v2908_v54, %v1188_v48 }
 0x26f   : > { %1893 = vst [vmem:[%s3269_s3 + $0xb8] sm:$0xff] %v1808_v21  ;;  %v1585_v47 = vadd.f32 %v1584_v16, %v1472_v57  ;;  %v1058_v13 = vsub.f32 1.5, %v1057_v43  ;;  %v1327_v51 = vadd.f32 %v2928_v26, %v1257_v45 }
 0x270   : > { %v1328_v25 = vadd.f32 %v2923_v60, %v1258_v35 }
 0x271   : > { %1894 = vst [vmem:[%s3269_s3 + $0xc0] sm:$0xff] %v1585_v47  ;;  %1494 = vmatmul.f32.gmra.mxu0 %v1324_v15  ;;  %v1059_v33 = vmul.f32 %v3733_v38, %v1058_v13  ;;  %v1259_v47 = vmul.f32 %v2913_v11, %v1189_v0 }
 0x272   : > { %v1697_v53 = vpop.f32.mrf.mxu2  ;;  %1720 = vmatmul.f32.gmra.mxu2 %v1324_v15  ;;  %1607 = vmatmul.f32.gmra.mxu1 %v1325_v62 }
 0x273   : > { %v1698_v24 = vadd.f32 %v1697_v53, %v3238_v27  ;;  %v1810_v42 = vpop.f32.mrf.mxu3  ;;  %1833 = vmatmul.f32.gmra.mxu3 %v1325_v62  ;;  %v1063_v16 = vsel %vm1062_vm8, %v3733_v38, %v1059_v33  ;;  %v1329_v49 = vadd.f32 %v2928_v26, %v1259_v47 }
 0x274   : > { %v1474_v56 = vpop.f32.mrf.mxu0  ;;  %v1190_v20 = vmul.f32 %v1063_v16, %v3429_v36  ;;  %v1191_v38 = vmul.f32 %v1063_v16, %v3432_v58 }
 0x275   : > { %v1811_v22 = vadd.f32 %v1810_v42, %v1698_v24  ;;  %v1475_v34 = vadd.f32 %v1474_v56, %v3212_v61  ;;  %v1587_v59 = vpop.f32.mrf.mxu1 }
 0x276   : > { %v1260_v62 = vmul.f32 %v2908_v54, %v1190_v20  ;;  %v1261_v28 = vmul.f32 %v2913_v11, %v1191_v38 }
 0x277   : > { %1895 = vst [vmem:[%s3269_s3 + $0xc8] sm:$0xff] %v1811_v22  ;;  %v1588_v6 = vadd.f32 %v1587_v59, %v1475_v34 }
 0x278   : > { %v1330_v42 = vadd.f32 %v2923_v60, %v1260_v62  ;;  %v1331_v22 = vadd.f32 %v2928_v26, %v1261_v28 }
 0x279   : > { %1896 = vst [vmem:[%s3269_s3 + $0xd0] sm:$0xff] %v1588_v6  ;;  %1497 = vmatmul.f32.gmra.mxu0 %v1326_v7 }
 0x27a   : > { %v1700_v39 = vpop.f32.mrf.mxu2  ;;  %1723 = vmatmul.f32.gmra.mxu2 %v1326_v7  ;;  %1610 = vmatmul.f32.gmra.mxu1 %v1327_v51 }
 0x27b   : > { %v1701_v3 = vadd.f32 %v1700_v39, %v3238_v27  ;;  %v1813_v21 = vpop.f32.mrf.mxu3  ;;  %1836 = vmatmul.f32.gmra.mxu3 %v1327_v51 }
 0x27c   : > { %v1477_v57 = vpop.f32.mrf.mxu0 }
 0x27d   : > { %v1814_v23 = vadd.f32 %v1813_v21, %v1701_v3  ;;  %v1478_v41 = vadd.f32 %v1477_v57, %v3212_v61  ;;  %v1590_v37 = vpop.f32.mrf.mxu1 }
 0x27f   : > { %1897 = vst [vmem:[%s3269_s3 + $0xd8] sm:$0xff] %v1814_v23  ;;  %v1591_v32 = vadd.f32 %v1590_v37, %v1478_v41 }
 0x281   : > { %1898 = vst [vmem:[%s3269_s3 + $0xe0] sm:$0xff] %v1591_v32  ;;  %1500 = vmatmul.f32.gmra.mxu0 %v1328_v25 }
 0x282   : > { %v1703_v15 = vpop.f32.mrf.mxu2  ;;  %1726 = vmatmul.f32.gmra.mxu2 %v1328_v25  ;;  %1613 = vmatmul.f32.gmra.mxu1 %v1329_v49 }
 0x283   : > { %v1704_v2 = vadd.f32 %v1703_v15, %v3238_v27  ;;  %v1816_v52 = vpop.f32.mrf.mxu3  ;;  %1839 = vmatmul.f32.gmra.mxu3 %v1329_v49 }
 0x284   : > { %v1480_v43 = vpop.f32.mrf.mxu0 }
 0x285   : > { %v1817_v53 = vadd.f32 %v1816_v52, %v1704_v2  ;;  %v1481_v24 = vadd.f32 %v1480_v43, %v3212_v61  ;;  %v1593_v36 = vpop.f32.mrf.mxu1 }
 0x287   : > { %1899 = vst [vmem:[%s3269_s3 + $0xe8] sm:$0xff] %v1817_v53  ;;  %v1594_v31 = vadd.f32 %v1593_v36, %v1481_v24 }
 0x289   : > { %1900 = vst [vmem:[%s3269_s3 + $0xf0] sm:$0xff] %v1594_v31  ;;  %1503 = vmatmul.f32.gmra.mxu0 %v1330_v42 }
 0x28a   : > { %v1706_v56 = vpop.f32.mrf.mxu2  ;;  %1729 = vmatmul.f32.gmra.mxu2 %v1330_v42  ;;  %1616 = vmatmul.f32.gmra.mxu1 %v1331_v22 }
 0x28b   : > { %v1707_v58 = vadd.f32 %v1706_v56, %v3238_v27  ;;  %v1819_v34 = vpop.f32.mrf.mxu3  ;;  %1842 = vmatmul.f32.gmra.mxu3 %v1331_v22 }
 0x28d   : > { %v1820_v12 = vadd.f32 %v1819_v34, %v1707_v58 }
 0x28f   : > { %1901 = vst [vmem:[%s3269_s3 + $0xf8] sm:$0xff] %v1820_v12 }
 0x2b6   : > { %v738_v13 = vpop.xlane.xlu1 %737 }
 0x2b7   : > { %v784_v59 = vmul.f32 %v738_v13, %v2699_v30 }
 0x2b9   : > { %v816_v14 = vadd.f32 1e-05, %v784_v59 }
 0x2bb   : > { %2256 = vrsqrt.f32 %v816_v14  ;;  %vm1070_vm10 = vweird.f32 %v816_v14 }
 0x2be   : > { %v744_v6 = vpop.xlane.xlu1 %743  ;;  %v741_v7 = vpop.xlane.xlu0 %740 }
 0x2bf   : > { %v786_v45 = vmul.f32 %v744_v6, %v2699_v30  ;;  %v785_v48 = vmul.f32 %v741_v7, %v2699_v30 }
 0x2c1   : > { %v2257_v33 = vpop.eup %2256  ;;  %v818_v39 = vadd.f32 1e-05, %v786_v45  ;;  %v817_v51 = vadd.f32 1e-05, %v785_v48 }
 0x2c2   : > { %v1065_v3 = vmul.f32 %v2257_v33, %v816_v14  ;;  %vm1071_vm9 = vweird.f32 %v2257_v33 }
 0x2c3   : > { %2258 = vrsqrt.f32 %v818_v39  ;;  %vm1072_vm11 = vmor %vm1070_vm10, %vm1071_vm9  ;;  %vm1090_vm12 = vweird.f32 %v818_v39  ;;  %vm1080_vm15 = vweird.f32 %v817_v51 }
 0x2c4   : > { %v1066_v0 = vmul.f32 %v2257_v33, %v1065_v3  ;;  %2260 = vrsqrt.f32 %v817_v51 }
 0x2c6   : > { %v1067_v21 = vmul.f32 0.5, %v1066_v0 }
 0x2c8   : > { %v1068_v57 = vsub.f32 1.5, %v1067_v21  ;;  %v747_v20 = vpop.xlane.xlu2 %746 }
 0x2c9   : > { %v2259_v23 = vpop.eup %2258  ;;  %v753_v25 = vpop.xlane.xlu1 %752  ;;  %v787_v49 = vmul.f32 %v747_v20, %v2699_v30 }
 0x2ca   : > { %v2261_v41 = vpop.eup %2260  ;;  %v1069_v35 = vmul.f32 %v2257_v33, %v1068_v57  ;;  %v1085_v37 = vmul.f32 %v2259_v23, %v818_v39  ;;  %v789_v2 = vmul.f32 %v753_v25, %v2699_v30  ;;  %vm1091_vm13 = vweird.f32 %v2259_v23 }
 0x2cb   : > { %v1075_v16 = vmul.f32 %v2261_v41, %v817_v51  ;;  %v3818_v31 = vadd.f32 1e-05, %v787_v49  ;;  %vm1081_vm14 = vweird.f32 %v2261_v41  ;;  %vm1092_vm1 = vmor %vm1090_vm12, %vm1091_vm13 }
 0x2cc   : > { %v1073_v32 = vsel %vm1072_vm11, %v2257_v33, %v1069_v35  ;;  %v1086_v47 = vmul.f32 %v2259_v23, %v1085_v37  ;;  %v1483_v38 = vpop.f32.mrf.mxu0  ;;  %v3816_v36 = vadd.f32 1e-05, %v789_v2  ;;  %v1596_v28 = vpop.f32.mrf.mxu1  ;;  %vm1082_vm0 = vmor %vm1080_vm15, %vm1081_vm14 }
 0x2cd   : > { %v1076_v15 = vmul.f32 %v2261_v41, %v1075_v16  ;;  %v1192_v52 = vmul.f32 %v1073_v32, %v3531_v44  ;;  %v1484_v53 = vadd.f32 %v1483_v38, %v3212_v61  ;;  %v1193_v24 = vmul.f32 %v1073_v32, %v3534_v17 }
 0x2ce   : > { %v1087_v43 = vmul.f32 0.5, %v1086_v47  ;;  %2262 = vrsqrt.f32 %v3816_v36  ;;  %vm1100_vm2 = vweird.f32 %v3818_v31  ;;  %vm1120_vm7 = vweird.f32 %v3816_v36 }
 0x2cf   : > { %v1077_v62 = vmul.f32 0.5, %v1076_v15  ;;  %v1262_v42 = vmul.f32 %v2908_v54, %v1192_v52  ;;  %v1597_v58 = vadd.f32 %v1596_v28, %v1484_v53  ;;  %v1263_v22 = vmul.f32 %v2913_v11, %v1193_v24 }
 0x2d0   : > { %v1088_v56 = vsub.f32 1.5, %v1087_v43  ;;  %2264 = vrsqrt.f32 %v3818_v31 }
 0x2d1   : > { %v1078_v44 = vsub.f32 1.5, %v1077_v62  ;;  %1902 = vst [vmem:[%s3269_s3 + $0x100] sm:$0xff] %v1597_v58  ;;  %v1332_v34 = vadd.f32 %v2923_v60, %v1262_v42  ;;  %v1333_v12 = vadd.f32 %v2928_v26, %v1263_v22  ;;  %v750_v59 = vpop.xlane.xlu0 %749 }
 0x2d2   : > { %v1089_v17 = vmul.f32 %v2259_v23, %v1088_v56  ;;  %v788_v45 = vmul.f32 %v750_v59, %v2699_v30 }
 0x2d3   : > { %v1079_v13 = vmul.f32 %v2261_v41, %v1078_v44  ;;  %v1709_v14 = vpop.f32.mrf.mxu2  ;;  %1506 = vmatmul.f32.gmra.mxu0 %v1332_v34  ;;  %1619 = vmatmul.f32.gmra.mxu1 %v1333_v12  ;;  %v1822_v33 = vpop.f32.mrf.mxu3 }
 0x2d4   : > { %v1710_v7 = vadd.f32 %v1709_v14, %v3238_v27  ;;  %1732 = vmatmul.f32.gmra.mxu2 %v1332_v34  ;;  %1845 = vmatmul.f32.gmra.mxu3 %v1333_v12  ;;  %v1093_v48 = vsel %vm1092_vm1, %v2259_v23, %v1089_v17  ;;  %v3833_v0 = vpop.eup %2262  ;;  %v3835_v21 = vadd.f32 1e-05, %v788_v45 }
 0x2d5   : > { %v1083_v6 = vsel %vm1082_vm0, %v2261_v41, %v1079_v13  ;;  %v1115_v37 = vmul.f32 %v3833_v0, %v3816_v36  ;;  %v1197_v20 = vmul.f32 %v1093_v48, %v3544_v1  ;;  %vm1121_vm8 = vweird.f32 %v3833_v0 }
 0x2d6   : > { %v1194_v3 = vmul.f32 %v1083_v6, %v3562_v18  ;;  %v1195_v51 = vmul.f32 %v1083_v6, %v3565_v46  ;;  %v1823_v39 = vadd.f32 %v1822_v33, %v1710_v7  ;;  %v2265_v57 = vpop.eup %2264  ;;  %2266 = vrsqrt.f32 %v3835_v21  ;;  %v1486_v18 = vpop.f32.mrf.mxu0  ;;  %vm1122_vm10 = vmor %vm1120_vm7, %vm1121_vm8 }
 0x2d7   : > { %v1095_v23 = vmul.f32 %v2265_v57, %v3818_v31  ;;  %v1196_v46 = vmul.f32 %v1093_v48, %v3541_v4  ;;  %v1487_v16 = vadd.f32 %v1486_v18, %v3212_v61  ;;  %v1599_v2 = vpop.f32.mrf.mxu1  ;;  %v1116_v52 = vmul.f32 %v3833_v0, %v1115_v37 }
 0x2d8   : > { %v1264_v41 = vmul.f32 %v2908_v54, %v1194_v3  ;;  %v1265_v35 = vmul.f32 %v2913_v11, %v1195_v51  ;;  %1903 = vst [vmem:[%s3269_s3 + $0x108] sm:$0xff] %v1823_v39  ;;  %v756_v32 = vpop.xlane.xlu2 %755  ;;  %v1267_v24 = vmul.f32 %v2913_v11, %v1197_v20  ;;  %vm1101_vm3 = vweird.f32 %v2265_v57 }
 0x2d9   : > { %v1096_v15 = vmul.f32 %v2265_v57, %v1095_v23  ;;  %v790_v49 = vmul.f32 %v756_v32, %v2699_v30  ;;  %v1600_v38 = vadd.f32 %v1599_v2, %v1487_v16  ;;  %v1266_v53 = vmul.f32 %v2908_v54, %v1196_v46  ;;  %vm1102_vm4 = vmor %vm1100_vm2, %vm1101_vm3 }
 0x2da   : > { %v1334_v47 = vadd.f32 %v2923_v60, %v1264_v41  ;;  %v1335_v25 = vadd.f32 %v2928_v26, %v1265_v35  ;;  %v1117_v58 = vmul.f32 0.5, %v1116_v52  ;;  %v1337_v59 = vadd.f32 %v2928_v26, %v1267_v24 }
 0x2db   : > { %v1097_v4 = vmul.f32 0.5, %v1096_v15  ;;  %v3851_v43 = vadd.f32 1e-05, %v790_v49  ;;  %1904 = vst [vmem:[%s3269_s3 + $0x110] sm:$0xff] %v1600_v38  ;;  %v1336_v34 = vadd.f32 %v2923_v60, %v1266_v53  ;;  %vm1110_vm5 = vweird.f32 %v3835_v21 }
 0x2dc   : > { %1509 = vmatmul.f32.gmra.mxu0 %v1334_v47  ;;  %1622 = vmatmul.f32.gmra.mxu1 %v1335_v25  ;;  %v2267_v1 = vpop.eup %2266  ;;  %v1712_v28 = vpop.f32.mrf.mxu2  ;;  %v1118_v51 = vsub.f32 1.5, %v1117_v58 }
 0x2dd   : > { %1735 = vmatmul.f32.gmra.mxu2 %v1334_v47  ;;  %1848 = vmatmul.f32.gmra.mxu3 %v1335_v25  ;;  %v1098_v62 = vsub.f32 1.5, %v1097_v4  ;;  %2268 = vrsqrt.f32 %v3851_v43  ;;  %v1105_v42 = vmul.f32 %v2267_v1, %v3835_v21  ;;  %v1713_v56 = vadd.f32 %v1712_v28, %v3238_v27  ;;  %v1825_v44 = vpop.f32.mrf.mxu3 }
 0x2de   : > { %v1489_v17 = vpop.f32.mrf.mxu0  ;;  %vm1111_vm6 = vweird.f32 %v2267_v1  ;;  %v1119_v46 = vmul.f32 %v3833_v0, %v1118_v51  ;;  %vm1130_vm11 = vweird.f32 %v3851_v43 }
 0x2df   : > { %v1099_v22 = vmul.f32 %v2265_v57, %v1098_v62  ;;  %v1106_v12 = vmul.f32 %v2267_v1, %v1105_v42  ;;  %v1826_v13 = vadd.f32 %v1825_v44, %v1713_v56  ;;  %v1490_v31 = vadd.f32 %v1489_v17, %v3212_v61  ;;  %v1602_v6 = vpop.f32.mrf.mxu1  ;;  %vm1112_vm9 = vmor %vm1110_vm5, %vm1111_vm6 }
 0x2e0   : > { %v1123_v62 = vsel %vm1122_vm10, %v3833_v0, %v1119_v46 }
 0x2e1   : > { %v1103_v14 = vsel %vm1102_vm4, %v2265_v57, %v1099_v22  ;;  %v759_v45 = vpop.xlane.xlu0 %758  ;;  %v1107_v7 = vmul.f32 0.5, %v1106_v12  ;;  %1905 = vst [vmem:[%s3269_s3 + $0x118] sm:$0xff] %v1826_v13  ;;  %v1603_v48 = vadd.f32 %v1602_v6, %v1490_v31  ;;  %v1202_v44 = vmul.f32 %v1123_v62, %v3618_v9 }
 0x2e2   : > { %v791_v33 = vmul.f32 %v759_v45, %v2699_v30  ;;  %v1198_v39 = vmul.f32 %v1103_v14, %v3608_v8  ;;  %v1199_v57 = vmul.f32 %v1103_v14, %v3611_v55  ;;  %v1203_v17 = vmul.f32 %v1123_v62, %v3626_v29 }
 0x2e3   : > { %v3865_v3 = vpop.eup %2268  ;;  %v1108_v41 = vsub.f32 1.5, %v1107_v7  ;;  %1906 = vst [vmem:[%s3269_s3 + $0x120] sm:$0xff] %v1603_v48  ;;  %v1272_v29 = vmul.f32 %v2908_v54, %v1202_v44 }
 0x2e4   : > { %1512 = vmatmul.f32.gmra.mxu0 %v1336_v34  ;;  %1625 = vmatmul.f32.gmra.mxu1 %v1337_v59  ;;  %v1125_v35 = vmul.f32 %v3865_v3, %v3851_v43  ;;  %v3873_v30 = vadd.f32 1e-05, %v791_v33  ;;  %v1268_v23 = vmul.f32 %v2908_v54, %v1198_v39  ;;  %v1269_v18 = vmul.f32 %v2913_v11, %v1199_v57 }
 0x2e5   : > { %1738 = vmatmul.f32.gmra.mxu2 %v1336_v34  ;;  %1851 = vmatmul.f32.gmra.mxu3 %v1337_v59  ;;  %v1715_v37 = vpop.f32.mrf.mxu2  ;;  %v1109_v8 = vmul.f32 %v2267_v1, %v1108_v41  ;;  %vm1131_vm12 = vweird.f32 %v3865_v3  ;;  %v1273_v6 = vmul.f32 %v2913_v11, %v1203_v17 }
 0x2e6   : > { %v1126_v55 = vmul.f32 %v3865_v3, %v1125_v35  ;;  %2270 = vrsqrt.f32 %v3873_v30  ;;  %v1716_v16 = vadd.f32 %v1715_v37, %v3238_v27  ;;  %v1828_v32 = vpop.f32.mrf.mxu3  ;;  %v1492_v47 = vpop.f32.mrf.mxu0  ;;  %v1338_v25 = vadd.f32 %v2923_v60, %v1268_v23  ;;  %vm1132_vm13 = vmor %vm1130_vm11, %vm1131_vm12 }
 0x2e7   : > { %v1113_v20 = vsel %vm1112_vm9, %v2267_v1, %v1109_v8  ;;  %v1493_v2 = vadd.f32 %v1492_v47, %v3212_v61  ;;  %v1339_v49 = vadd.f32 %v2928_v26, %v1269_v18  ;;  %v1605_v21 = vpop.f32.mrf.mxu1  ;;  %vm1140_vm14 = vweird.f32 %v3873_v30 }
 0x2e8   : > { %v1127_v15 = vmul.f32 0.5, %v1126_v55  ;;  %v1829_v38 = vadd.f32 %v1828_v32, %v1716_v16  ;;  %v1200_v52 = vmul.f32 %v1113_v20, %v3664_v19  ;;  %v1201_v4 = vmul.f32 %v1113_v20, %v3667_v63 }
 0x2e9   : > { %v1606_v53 = vadd.f32 %v1605_v21, %v1493_v2  ;;  %v1342_v35 = vadd.f32 %v2923_v60, %v1272_v29  ;;  %v1343_v37 = vadd.f32 %v2928_v26, %v1273_v6 }
 0x2ea   : > { %v1128_v24 = vsub.f32 1.5, %v1127_v15  ;;  %1907 = vst [vmem:[%s3269_s3 + $0x128] sm:$0xff] %v1829_v38  ;;  %v1270_v36 = vmul.f32 %v2908_v54, %v1200_v52  ;;  %v1271_v28 = vmul.f32 %v2913_v11, %v1201_v4 }
 0x2eb   : > { %1908 = vst [vmem:[%s3269_s3 + $0x130] sm:$0xff] %v1606_v53 }
 0x2ec   : > { %1515 = vmatmul.f32.gmra.mxu0 %v1338_v25  ;;  %1628 = vmatmul.f32.gmra.mxu1 %v1339_v49  ;;  %v2271_v1 = vpop.eup %2270  ;;  %v1129_v56 = vmul.f32 %v3865_v3, %v1128_v24  ;;  %v1340_v43 = vadd.f32 %v2923_v60, %v1270_v36  ;;  %v1341_v13 = vadd.f32 %v2928_v26, %v1271_v28 }
 0x2ed   : > { %1741 = vmatmul.f32.gmra.mxu2 %v1338_v25  ;;  %1854 = vmatmul.f32.gmra.mxu3 %v1339_v49  ;;  %v1135_v42 = vmul.f32 %v2271_v1, %v3873_v30  ;;  %v1718_v19 = vpop.f32.mrf.mxu2  ;;  %vm1141_vm15 = vweird.f32 %v2271_v1 }
 0x2ee   : > { %v1719_v63 = vadd.f32 %v1718_v19, %v3238_v27  ;;  %v1831_v22 = vpop.f32.mrf.mxu3  ;;  %v1495_v0 = vpop.f32.mrf.mxu0  ;;  %v1133_v9 = vsel %vm1132_vm13, %v3865_v3, %v1129_v56  ;;  %vm1142_vm0 = vmor %vm1140_vm14, %vm1141_vm15 }
 0x2ef   : > { %v1136_v58 = vmul.f32 %v2271_v1, %v1135_v42  ;;  %v1496_v12 = vadd.f32 %v1495_v0, %v3212_v61  ;;  %v1608_v59 = vpop.f32.mrf.mxu1  ;;  %v1204_v39 = vmul.f32 %v1133_v9, %v3697_v5  ;;  %v1205_v57 = vmul.f32 %v1133_v9, %v3700_v10 }
 0x2f0   : > { %v1832_v34 = vadd.f32 %v1831_v22, %v1719_v63 }
 0x2f1   : > { %v1137_v31 = vmul.f32 0.5, %v1136_v58  ;;  %v1609_v14 = vadd.f32 %v1608_v59, %v1496_v12  ;;  %v1274_v5 = vmul.f32 %v2908_v54, %v1204_v39  ;;  %v1275_v10 = vmul.f32 %v2913_v11, %v1205_v57 }
 0x2f2   : > { %1909 = vst [vmem:[%s3269_s3 + $0x138] sm:$0xff] %v1832_v34 }
 0x2f3   : > { %1910 = vst [vmem:[%s3269_s3 + $0x140] sm:$0xff] %v1609_v14  ;;  %v1138_v45 = vsub.f32 1.5, %v1137_v31  ;;  %v1344_v47 = vadd.f32 %v2923_v60, %v1274_v5  ;;  %v1345_v25 = vadd.f32 %v2928_v26, %v1275_v10 }
 0x2f4   : > { %1518 = vmatmul.f32.gmra.mxu0 %v1340_v43  ;;  %1631 = vmatmul.f32.gmra.mxu1 %v1341_v13 }
 0x2f5   : > { %1744 = vmatmul.f32.gmra.mxu2 %v1340_v43  ;;  %1857 = vmatmul.f32.gmra.mxu3 %v1341_v13  ;;  %v1721_v7 = vpop.f32.mrf.mxu2  ;;  %v1139_v23 = vmul.f32 %v2271_v1, %v1138_v45 }
 0x2f6   : > { %v1722_v48 = vadd.f32 %v1721_v7, %v3238_v27  ;;  %v1834_v33 = vpop.f32.mrf.mxu3  ;;  %v1498_v51 = vpop.f32.mrf.mxu0 }
 0x2f7   : > { %v1499_v41 = vadd.f32 %v1498_v51, %v3212_v61  ;;  %v1611_v18 = vpop.f32.mrf.mxu1  ;;  %v1143_v8 = vsel %vm1142_vm0, %v2271_v1, %v1139_v23 }
 0x2f8   : > { %v1835_v3 = vadd.f32 %v1834_v33, %v1722_v48  ;;  %v1206_v2 = vmul.f32 %v1143_v8, %v3738_v40  ;;  %v1207_v49 = vmul.f32 %v1143_v8, %v3741_v50 }
 0x2f9   : > { %v1612_v30 = vadd.f32 %v1611_v18, %v1499_v41 }
 0x2fa   : > { %1911 = vst [vmem:[%s3269_s3 + $0x148] sm:$0xff] %v1835_v3  ;;  %v1276_v52 = vmul.f32 %v2908_v54, %v1206_v2  ;;  %v1277_v4 = vmul.f32 %v2913_v11, %v1207_v49 }
 0x2fb   : > { %1912 = vst [vmem:[%s3269_s3 + $0x150] sm:$0xff] %v1612_v30 }
 0x2fc   : > { %1521 = vmatmul.f32.gmra.mxu0 %v1342_v35  ;;  %1634 = vmatmul.f32.gmra.mxu1 %v1343_v37  ;;  %v1346_v36 = vadd.f32 %v2923_v60, %v1276_v52  ;;  %v1347_v28 = vadd.f32 %v2928_v26, %v1277_v4 }
 0x2fd   : > { %1747 = vmatmul.f32.gmra.mxu2 %v1342_v35  ;;  %1860 = vmatmul.f32.gmra.mxu3 %v1343_v37  ;;  %v1724_v55 = vpop.f32.mrf.mxu2 }
 0x2fe   : > { %v1725_v46 = vadd.f32 %v1724_v55, %v3238_v27  ;;  %v1837_v16 = vpop.f32.mrf.mxu3  ;;  %v1501_v32 = vpop.f32.mrf.mxu0 }
 0x2ff   : > { %v1502_v15 = vadd.f32 %v1501_v32, %v3212_v61  ;;  %v1614_v38 = vpop.f32.mrf.mxu1 }
 0x300   : > { %v1838_v20 = vadd.f32 %v1837_v16, %v1725_v46 }
 0x301   : > { %v1615_v21 = vadd.f32 %v1614_v38, %v1502_v15 }
 0x302   : > { %1913 = vst [vmem:[%s3269_s3 + $0x158] sm:$0xff] %v1838_v20 }
 0x303   : > { %1914 = vst [vmem:[%s3269_s3 + $0x160] sm:$0xff] %v1615_v21 }
 0x304   : > { %1524 = vmatmul.f32.gmra.mxu0 %v1344_v47  ;;  %1637 = vmatmul.f32.gmra.mxu1 %v1345_v25 }
 0x305   : > { %1750 = vmatmul.f32.gmra.mxu2 %v1344_v47  ;;  %1863 = vmatmul.f32.gmra.mxu3 %v1345_v25  ;;  %v1727_v53 = vpop.f32.mrf.mxu2 }
 0x306   : > { %v1728_v24 = vadd.f32 %v1727_v53, %v3238_v27  ;;  %v1840_v40 = vpop.f32.mrf.mxu3  ;;  %v1504_v1 = vpop.f32.mrf.mxu0 }
 0x307   : > { %v1505_v62 = vadd.f32 %v1504_v1, %v3212_v61  ;;  %v1617_v42 = vpop.f32.mrf.mxu1 }
 0x308   : > { %v1841_v50 = vadd.f32 %v1840_v40, %v1728_v24 }
 0x309   : > { %v1618_v54 = vadd.f32 %v1617_v42, %v1505_v62 }
 0x30a   : > { %1915 = vst [vmem:[%s3269_s3 + $0x168] sm:$0xff] %v1841_v50 }
 0x30b   : > { %1916 = vst [vmem:[%s3269_s3 + $0x170] sm:$0xff] %v1618_v54 }
 0x30c   : > { %1527 = vmatmul.f32.gmra.mxu0 %v1346_v36  ;;  %1640 = vmatmul.f32.gmra.mxu1 %v1347_v28 }
 0x30d   : > { %1753 = vmatmul.f32.gmra.mxu2 %v1346_v36  ;;  %1866 = vmatmul.f32.gmra.mxu3 %v1347_v28  ;;  %v1730_v11 = vpop.f32.mrf.mxu2 }
 0x30e   : > { %v1731_v19 = vadd.f32 %v1730_v11, %v3238_v27  ;;  %v1843_v63 = vpop.f32.mrf.mxu3 }
 0x310   : > { %v1844_v56 = vadd.f32 %v1843_v63, %v1731_v19 }
 0x312   : > { %1917 = vst [vmem:[%s3269_s3 + $0x178] sm:$0xff] %v1844_v56 }
 0x350   : > { %v1507_v60 = vpop.f32.mrf.mxu0  ;;  %v1620_v58 = vpop.f32.mrf.mxu1 }
 0x351   : > { %v1508_v26 = vadd.f32 %v1507_v60, %v3212_v61 }
 0x353   : > { %v1621_v22 = vadd.f32 %v1620_v58, %v1508_v26 }
 0x355   : > { %1918 = vst [vmem:[%s3269_s3 + $0x180] sm:$0xff] %v1621_v22 }
 0x357   : > { %v1733_v0 = vpop.f32.mrf.mxu2  ;;  %v1846_v44 = vpop.f32.mrf.mxu3 }
 0x358   : > { %v1734_v17 = vadd.f32 %v1733_v0, %v3238_v27 }
 0x359   : > { %v1510_v34 = vpop.f32.mrf.mxu0  ;;  %v1623_v12 = vpop.f32.mrf.mxu1 }
 0x35a   : > { %v1511_v43 = vadd.f32 %v1510_v34, %v3212_v61  ;;  %v1847_v13 = vadd.f32 %v1846_v44, %v1734_v17 }
 0x35c   : > { %v1624_v31 = vadd.f32 %v1623_v12, %v1511_v43  ;;  %1919 = vst [vmem:[%s3269_s3 + $0x188] sm:$0xff] %v1847_v13 }
 0x35e   : > { %1920 = vst [vmem:[%s3269_s3 + $0x190] sm:$0xff] %v1624_v31 }
 0x360   : > { %v1736_v59 = vpop.f32.mrf.mxu2  ;;  %v1849_v14 = vpop.f32.mrf.mxu3 }
 0x361   : > { %v1737_v9 = vadd.f32 %v1736_v59, %v3238_v27  ;;  %v1513_v29 = vpop.f32.mrf.mxu0  ;;  %v1626_v6 = vpop.f32.mrf.mxu1 }
 0x362   : > { %v1514_v45 = vadd.f32 %v1513_v29, %v3212_v61 }
 0x363   : > { %v1850_v7 = vadd.f32 %v1849_v14, %v1737_v9 }
 0x364   : > { %v1627_v48 = vadd.f32 %v1626_v6, %v1514_v45 }
 0x365   : > { %1921 = vst [vmem:[%s3269_s3 + $0x198] sm:$0xff] %v1850_v7 }
 0x366   : > { %1922 = vst [vmem:[%s3269_s3 + $0x1a0] sm:$0xff] %v1627_v48 }
 0x368   : > { %v1739_v33 = vpop.f32.mrf.mxu2  ;;  %v1852_v51 = vpop.f32.mrf.mxu3 }
 0x369   : > { %v1740_v39 = vadd.f32 %v1739_v33, %v3238_v27  ;;  %v1516_v57 = vpop.f32.mrf.mxu0  ;;  %v1629_v3 = vpop.f32.mrf.mxu1 }
 0x36a   : > { %v1517_v41 = vadd.f32 %v1516_v57, %v3212_v61 }
 0x36b   : > { %v1853_v35 = vadd.f32 %v1852_v51, %v1740_v39 }
 0x36c   : > { %v1630_v37 = vadd.f32 %v1629_v3, %v1517_v41 }
 0x36d   : > { %1923 = vst [vmem:[%s3269_s3 + $0x1a8] sm:$0xff] %v1853_v35 }
 0x36e   : > { %1924 = vst [vmem:[%s3269_s3 + $0x1b0] sm:$0xff] %v1630_v37 }
 0x370   : > { %v1742_v23 = vpop.f32.mrf.mxu2  ;;  %v1855_v18 = vpop.f32.mrf.mxu3 }
 0x371   : > { %v1743_v30 = vadd.f32 %v1742_v23, %v3238_v27  ;;  %v1519_v5 = vpop.f32.mrf.mxu0  ;;  %v1632_v10 = vpop.f32.mrf.mxu1 }
 0x372   : > { %v1520_v8 = vadd.f32 %v1519_v5, %v3212_v61 }
 0x373   : > { %v1856_v55 = vadd.f32 %v1855_v18, %v1743_v30 }
 0x374   : > { %v1633_v46 = vadd.f32 %v1632_v10, %v1520_v8 }
 0x375   : > { %1925 = vst [vmem:[%s3269_s3 + $0x1b8] sm:$0xff] %v1856_v55 }
 0x376   : > { %1926 = vst [vmem:[%s3269_s3 + $0x1c0] sm:$0xff] %v1633_v46 }
 0x378   : > { %v1745_v16 = vpop.f32.mrf.mxu2  ;;  %v1858_v32 = vpop.f32.mrf.mxu3 }
 0x379   : > { %v1746_v47 = vadd.f32 %v1745_v16, %v3238_v27  ;;  %v1522_v25 = vpop.f32.mrf.mxu0  ;;  %v1635_v20 = vpop.f32.mrf.mxu1 }
 0x37a   : > { %v1523_v15 = vadd.f32 %v1522_v25, %v3212_v61 }
 0x37b   : > { %v1859_v2 = vadd.f32 %v1858_v32, %v1746_v47 }
 0x37c   : > { %v1636_v49 = vadd.f32 %v1635_v20, %v1523_v15 }
 0x37d   : > { %1927 = vst [vmem:[%s3269_s3 + $0x1c8] sm:$0xff] %v1859_v2 }
 0x37e   : > { %1928 = vst [vmem:[%s3269_s3 + $0x1d0] sm:$0xff] %v1636_v49 }
 0x380   : > { %v1748_v38 = vpop.f32.mrf.mxu2  ;;  %v1861_v21 = vpop.f32.mrf.mxu3 }
 0x381   : > { %v1749_v52 = vadd.f32 %v1748_v38, %v3238_v27  ;;  %v1525_v4 = vpop.f32.mrf.mxu0  ;;  %v1638_v53 = vpop.f32.mrf.mxu1 }
 0x382   : > { %v1526_v24 = vadd.f32 %v1525_v4, %v3212_v61 }
 0x383   : > { %v1862_v40 = vadd.f32 %v1861_v21, %v1749_v52 }
 0x384   : > { %v1639_v1 = vadd.f32 %v1638_v53, %v1526_v24 }
 0x385   : > { %1929 = vst [vmem:[%s3269_s3 + $0x1d8] sm:$0xff] %v1862_v40 }
 0x386   : > { %1930 = vst [vmem:[%s3269_s3 + $0x1e0] sm:$0xff] %v1639_v1 }
 0x388   : > { %v1751_v50 = vpop.f32.mrf.mxu2  ;;  %v1864_v62 = vpop.f32.mrf.mxu3 }
 0x389   : > { %v1752_v36 = vadd.f32 %v1751_v50, %v3238_v27  ;;  %v1528_v28 = vpop.f32.mrf.mxu0  ;;  %v1641_v11 = vpop.f32.mrf.mxu1 }
 0x38a   : > { %v1529_v42 = vadd.f32 %v1528_v28, %v3212_v61 }
 0x38b   : > { %v1865_v54 = vadd.f32 %v1864_v62, %v1752_v36 }
 0x38c   : > { %v1642_v19 = vadd.f32 %v1641_v11, %v1529_v42 }
 0x38d   : > { %1931 = vst [vmem:[%s3269_s3 + $0x1e8] sm:$0xff] %v1865_v54 }
 0x38e   : > { %1932 = vst [vmem:[%s3269_s3 + $0x1f0] sm:$0xff] %v1642_v19 }
 0x390   : > { %v1754_v63 = vpop.f32.mrf.mxu2  ;;  %v1867_v60 = vpop.f32.mrf.mxu3 }
 0x391   : > { %v1755_v56 = vadd.f32 %v1754_v63, %v3238_v27 }
 0x393   : > { %v1868_v61 = vadd.f32 %v1867_v60, %v1755_v56 }
 0x395   : > { %1933 = vst [vmem:[%s3269_s3 + $0x1f8] sm:$0xff] %v1868_v61 }
 0x396   : > { %2419 = shalt.err (!%p2416_p0)
}
 0x397   : > { %s2490_s7 = smov 256   ;;  %s2491_s13 = smov 16  }
 0x398   : > { %2122 = dma.vmem_to_hbm [thread:$0]  (%p2614_p3), %s1951_s11, 8192, %s1953_s14, %s1935_s21, %s2490_s7, %s2490_s7, %s2491_s13  }
 0x399 PF: > { %s1967_s1 = sand.u32 1, %s2462_s18   ;;  %p2139_p5 = pnand %p2087_p9, %p2571_p6 }
 0x39a   : > { %s1968_s2 = scalar_lea.sflag [#allocation4], %s1967_s1 }
 0x39b   : > { %p2140_p7 = pneg %p2139_p5 }
 0x39d   : > { %2457 = dma.done.wait (%p2140_p7), %s1968_s2, 8192  }
 0x39e   : > { %2459 = vsyncadd (%p2140_p7), %s1968_s2, 4294959104  ;;  %s23_s23 = sadd.s32 1, %s2482_s23   ;;  %s4080_s18 = smov %s2466_s19 }
 0x39f   : > { %p20_p10 = scmp.ge.s32.totalorder %s23_s23, 4   ;;  %s4081_s19 = smov %s2470_s20 }
 0x3a0   : > { %s4082_s20 = smov %s2630_s27  ;;  %s4083_s21 = smov %s2478_s22 }
 0x3a1   : > { %s4084_s22 = smov %s4086_s10  ;;  %22 = sbr.rel (!%p20_p10) target bundleno = 12 (0xc), region = 101 }
 0x3a6   :  { %1974 = vsyncpa [#allocation3], 1 }
 0x3a7   :  { %1976 = vsyncpa [#allocation3 + $0x1], 1 }
 0x3a8   :  { %1977 = vsyncpa [#allocation6], 1 }
 0x3a9   :  { %1978 = vsyncpa [#allocation9], 1 }
 0x3aa   :  { %1979 = vsyncpa [#allocation4], 1 }
 0x3ab   :  { %1981 = vsyncpa [#allocation4 + $0x1], 1 }

</bundles_post_ra>
